<compile_context>
chip_gen: v5e
topology: v5e:2x2
jax: 0.10.0
libtpu: 0.0.40
codegen_flags: <defaults>
</compile_context>

<pallas_src>
import functools

import jax
import jax.numpy as jnp
from jax import lax
from jax.experimental import pallas as pl
from jax.experimental.pallas import tpu as pltpu


# ----------------------------------------------------------------------------
# Bidirectional LSTM layer kernel.
# grid = (2 directions, T // Tc time chunks).
# ----------------------------------------------------------------------------
def _bilstm_layer_kernel(Tc, H, len_ref, x_ref, wih_ref, whh_ref, b_ref,
                         out_ref, hN_ref, h_sc, c_sc, gx_sc):
    d = pl.program_id(0)               # 0 = forward, 1 = backward
    c = pl.program_id(1)               # chunk counter (index maps reverse it for d==1)
    n_chunks = pl.num_programs(1)
    B = h_sc.shape[0]
    Din = x_ref.shape[-1]

    # Memory-order index of the chunk actually fetched by the index maps.
    cc = c + d * (n_chunks - 1 - 2 * c)

    @pl.when(c == 0)
    def _():                           # zero initial state for this direction
        h_sc[...] = jnp.zeros_like(h_sc)
        c_sc[...] = jnp.zeros_like(c_sc)

    # ---- chunk-wide input projection: a single (Tc*B, Din) x (Din, 4H) MXU
    # matmul (Din = 2H for layers > 0 -> MXU K dimension is full depth).
    xm = x_ref[...].reshape(Tc * B, Din)                       # bf16
    gx = jnp.dot(xm, wih_ref[...], preferred_element_type=jnp.float32)
    gx_sc[...] = (gx + b_ref[...]).reshape(Tc, B, 4 * H)

    whh = whh_ref[...]                 # (H, 4H) bf16, VMEM-resident
    lengths = len_ref[...]             # (B, 1) int32, fetched once per layer

    def sigm(v):                       # one EUP pass (tanh) instead of exp+rcp
        return 0.5 * (jnp.tanh(0.5 * v) + 1.0)

    def step(j, carry):
        h, cell = carry
        # Local memory-order timestep inside the chunk (reversed for d == 1).
        t = j + d * (Tc - 1 - 2 * j)
        gates = gx_sc[t] + jnp.dot(h.astype(jnp.bfloat16), whh,
                                   preferred_element_type=jnp.float32)
        i_g = sigm(gates[:, 0 * H:1 * H])
        f_g = sigm(gates[:, 1 * H:2 * H])
        g_g = jnp.tanh(gates[:, 2 * H:3 * H])
        o_g = sigm(gates[:, 3 * H:4 * H])
        c_new = f_g * cell + i_g * g_g
        h_new = o_g * jnp.tanh(c_new)

        # Packed-sequence mask built in-kernel from lengths (no mask DMA).
        tg = cc * Tc + t                                   # global time index
        m_b = jnp.broadcast_to(lengths > tg, (B, H))       # hoisted, reused 3x
        out_ref[t] = jnp.where(m_b, h_new, 0.0).astype(out_ref.dtype)
        return (jnp.where(m_b, h_new, h), jnp.where(m_b, c_new, cell))

    h_fin, c_fin = lax.fori_loop(0, Tc, step, (h_sc[...], c_sc[...]),
                                 unroll=True)
    h_sc[...] = h_fin
    c_sc[...] = c_fin

    # Final hidden state of this direction — only written on the last chunk.
    @pl.when(c == n_chunks - 1)
    def _():
        hN_ref[...] = h_fin


def bilstm_layer(x, lengths, w_ih, w_hh, b, *, time_chunk=8,
                 vmem_limit_bytes=48 * 1024 * 1024):
    """One bidirectional LSTM layer.

    x:       (T, B, Din) bf16 input (layer 0: embeddings; later layers: the
             previous layer's (T, B, 2H) output — fwd|bwd already interleaved
             in the last dim by the store layout).
    lengths: (B, 1) int32 sequence lengths (padded batch rows have length 0).
    w_ih: (2, Din, 4H) bf16, w_hh: (2, H, 4H) bf16, b: (2, 1, 4H) f32.

    Returns (out, h_n): out (T, B, 2H) bf16 per-step hidden states
    (fwd in [:, :, :H], bwd in [:, :, H:]), h_n (B, 2H) f32 final hidden
    states (same fwd|bwd layout).
    """
    T, B, Din = x.shape
    H = w_hh.shape[1]
    Tc = min(time_chunk, T)
    assert T % Tc == 0, "caller must pad T to a multiple of the time chunk"
    assert B % 8 == 0, "caller must pad B to a multiple of 8 (sublane)"
    assert H % 128 == 0, "H must be lane-aligned for the (T, B, 2H) layout"
    n_chunks = T // Tc

    def chunk(d, c):                   # forward: c ; backward: n_chunks-1-c
        return c + d * (n_chunks - 1 - 2 * c)

    kernel = functools.partial(_bilstm_layer_kernel, Tc, H)

    out, h_n = pl.pallas_call(
        kernel,
        out_shape=(jax.ShapeDtypeStruct((T, B, 2 * H), jnp.bfloat16),
                   jax.ShapeDtypeStruct((B, 2 * H), jnp.float32)),
        grid=(2, n_chunks),
        in_specs=[
            pl.BlockSpec((B, 1), lambda d, c: (0, 0)),                     # lengths
            pl.BlockSpec((Tc, B, Din), lambda d, c: (chunk(d, c), 0, 0)),  # x
            pl.BlockSpec((None, Din, 4 * H), lambda d, c: (d, 0, 0)),      # w_ih
            pl.BlockSpec((None, H, 4 * H), lambda d, c: (d, 0, 0)),        # w_hh
            pl.BlockSpec((None, 1, 4 * H), lambda d, c: (d, 0, 0)),        # bias
        ],
        out_specs=(
            # Each direction writes its lane-aligned H-slab of the 2H output.
            pl.BlockSpec((Tc, B, H), lambda d, c: (chunk(d, c), 0, d)),
            pl.BlockSpec((B, H), lambda d, c: (0, d)),
        ),
        scratch_shapes=[
            pltpu.VMEM((B, H), jnp.float32),           # h carry
            pltpu.VMEM((B, H), jnp.float32),           # c carry
            pltpu.VMEM((Tc, B, 4 * H), jnp.float32),   # chunk input projection
        ],
        compiler_params=pltpu.CompilerParams(
            dimension_semantics=("parallel", "arbitrary"),
            vmem_limit_bytes=vmem_limit_bytes),
    )(lengths, x, w_ih, w_hh, b)
    return out, h_n


# ----------------------------------------------------------------------------
# Parameter init + full forward pass (glue in plain JAX).
# ----------------------------------------------------------------------------
def init_params(key, vocab_size, embedding_dim, hidden_dim, n_layers, pad_idx):
    def nxt():
        nonlocal key
        key, sub = jax.random.split(key)
        return sub

    H = hidden_dim
    k = 1.0 / jnp.sqrt(jnp.float32(H))

    emb = 0.1 * jax.random.normal(nxt(), (vocab_size, embedding_dim),
                                  dtype=jnp.float32)
    emb = emb.at[pad_idx].set(0.0)            # padding_idx row is zero

    lstm = []
    for layer in range(n_layers):
        Din = embedding_dim if layer == 0 else 2 * H
        # Weights stacked over direction (dim 0), stored bf16 (MXU-native).
        # Bias is b_ih + b_hh (sum of two uniforms), kept f32.
        w_ih = jax.random.uniform(nxt(), (2, Din, 4 * H), jnp.float32, -k, k)
        w_hh = jax.random.uniform(nxt(), (2, H, 4 * H), jnp.float32, -k, k)
        bias = (jax.random.uniform(nxt(), (2, 1, 4 * H), jnp.float32, -k, k)
                + jax.random.uniform(nxt(), (2, 1, 4 * H), jnp.float32, -k, k))
        lstm.append({"w_ih": w_ih.astype(jnp.bfloat16),
                     "w_hh": w_hh.astype(jnp.bfloat16),
                     "b": bias})

    fc_w = jax.random.uniform(nxt(), (2 * H, 1), jnp.float32, -k, k)
    fc_b = jnp.zeros((1, 1), dtype=jnp.float32)
    return {"embedding": emb, "lstm": lstm, "fc_w": fc_w, "fc_b": fc_b}


def rnn_forward(params, text, text_lengths, *, time_chunk=8, batch_pad=8):
    T, B = text.shape

    # Embedding lookup stays in XLA (data-dependent gather); dropout = identity
    # in eval mode.  Activations carried in bf16 between layers.
    emb = params["embedding"][text].astype(jnp.bfloat16)       # (T, B, E)

    # Pad time to a chunk multiple and batch to a sublane multiple so all
    # kernel blocks are full tiles; padded rows get length 0 (fully masked).
    # For production, raise batch_pad to 128/256 so the per-step hidden matmul
    # fills the MXU rows.
    Tc = time_chunk
    T_pad = -(-T // Tc) * Tc
    B_pad = -(-max(B, batch_pad) // batch_pad) * batch_pad
    B_pad = -(-B_pad // 8) * 8
    emb = jnp.pad(emb, ((0, T_pad - T), (0, B_pad - B), (0, 0)))
    lengths = jnp.pad(text_lengths.astype(jnp.int32), (0, B_pad - B))[:, None]

    x = emb                                                    # (T_pad, B_pad, E)
    h_n = None
    for lp in params["lstm"]:
        x, h_n = bilstm_layer(x, lengths, lp["w_ih"], lp["w_hh"], lp["b"],
                              time_chunk=Tc)
        # x is (T_pad, B_pad, 2H) bf16 — the next layer consumes it with a
        # single K=2H matmul.  Inter-layer dropout: eval identity.

    # h_n already holds cat(fwd final h, bwd final h) along the last dim.
    # Final Linear left to XLA (tiny matmul; standalone pallas_call would be
    # launch-cost bound with 1-wide masked stores).
    hidden = h_n[:B].astype(jnp.float32)                       # (B, 2H)
    return hidden @ params["fc_w"] + params["fc_b"]            # (B, 1)


if __name__ == "__main__":
    vocab_size = 50
    embedding_dim = 64
    hidden_dim = 128          # must be a multiple of 128 (lane-aligned slabs)
    n_layers = 2
    pad_idx = 0
    T, B = 8, 2

    key = jax.random.PRNGKey(0)
    pkey, tkey = jax.random.split(key)

    params = init_params(pkey, vocab_size, embedding_dim, hidden_dim,
                         n_layers, pad_idx)

    # Variable-length batch (sorted descending, like enforce_sorted=True).
    text_lengths = jnp.array([8, 5], dtype=jnp.int32)
    text = jax.random.randint(tkey, (T, B), 1, vocab_size, dtype=jnp.int32)
    pos = jnp.arange(T)[:, None]
    text = jnp.where(pos < text_lengths[None, :], text, pad_idx)

    out = rnn_forward(params, text, text_lengths)
    jax.block_until_ready(out)
    assert out.shape == (B, 1)
    print("KERNEL_OK")
</pallas_src>

<mosaic_0001>
module attributes {stable_mosaic.version = 11 : i64} {
  func.func @_bilstm_layer_kernel(%arg0: i32, %arg1: i32, %arg2: memref<8x1xi32, #tpu.memory_space<vmem>>, %arg3: memref<8x8x64xbf16, #tpu.memory_space<vmem>>, %arg4: memref<1x64x512xbf16, #tpu.memory_space<vmem>>, %arg5: memref<1x128x512xbf16, #tpu.memory_space<vmem>>, %arg6: memref<1x1x512xf32, #tpu.memory_space<vmem>>, %arg7: memref<8x8x128xbf16, #tpu.memory_space<vmem>>, %arg8: memref<8x128xf32, #tpu.memory_space<vmem>>, %arg9: memref<8x128xf32, #tpu.memory_space<vmem>>, %arg10: memref<8x128xf32, #tpu.memory_space<vmem>>, %arg11: memref<8x8x512xf32, #tpu.memory_space<vmem>>) attributes {dimension_semantics = [#tpu.dimension_semantics<parallel>, #tpu.dimension_semantics<arbitrary>], iteration_bounds = array<i64: 2, 1>, scalar_prefetch = 0 : i64, scratch_operands = 3 : i64, tpu.core_type = #tpu.core_type<tc>, window_params = [{pipeline_mode = #tpu.pipeline_mode<synchronous>, transform_indices = @transform_0, window_bounds = array<i64: 8, 1>}, {transform_indices = @transform_1, window_bounds = array<i64: 8, 8, 64>}, {transform_indices = @transform_2, window_bounds = array<i64: 1, 64, 512>}, {transform_indices = @transform_3, window_bounds = array<i64: 1, 128, 512>}, {transform_indices = @transform_4, window_bounds = array<i64: 1, 1, 512>}, {transform_indices = @transform_5, window_bounds = array<i64: 8, 8, 128>}, {transform_indices = @transform_6, window_bounds = array<i64: 8, 128>}]} {
    %c2_i32 = arith.constant 2 : i32
    %0 = arith.muli %c2_i32, %arg1 : i32
    %c0_i32 = arith.constant 0 : i32
    %1 = arith.subi %c0_i32, %0 : i32
    %2 = arith.muli %arg0, %1 : i32
    %3 = arith.addi %arg1, %2 : i32
    %c0_i32_0 = arith.constant 0 : i32
    %4 = arith.cmpi eq, %arg1, %c0_i32_0 : i32
    %5 = arith.extui %4 : i1 to i32
    %c0_i32_1 = arith.constant 0 : i32
    %6 = arith.cmpi ne, %5, %c0_i32_1 : i32
    scf.if %6 {
      %cst_174 = arith.constant 0.000000e+00 : f32
      %476 = vector.broadcast %cst_174 : f32 to vector<8x128xf32>
      %c0_175 = arith.constant 0 : index
      %c0_176 = arith.constant 0 : index
      %477 = vector.load %arg9[%c0_175, %c0_176] : memref<8x128xf32, #tpu.memory_space<vmem>>, vector<8x128xf32>
      tpu.vector_store %arg9[%c0_175, %c0_176], %476 {strides = array<i32>} : memref<8x128xf32, #tpu.memory_space<vmem>>, vector<8x128xf32>,
      %cst_177 = arith.constant 0.000000e+00 : f32
      %478 = vector.broadcast %cst_177 : f32 to vector<8x128xf32>
      %c0_178 = arith.constant 0 : index
      %c0_179 = arith.constant 0 : index
      %479 = vector.load %arg10[%c0_178, %c0_179] : memref<8x128xf32, #tpu.memory_space<vmem>>, vector<8x128xf32>
      tpu.vector_store %arg10[%c0_178, %c0_179], %478 {strides = array<i32>} : memref<8x128xf32, #tpu.memory_space<vmem>>, vector<8x128xf32>,
    } else {
    }
    %c0 = arith.constant 0 : index
    %c0_2 = arith.constant 0 : index
    %c0_3 = arith.constant 0 : index
    %7 = vector.load %arg3[%c0, %c0_2, %c0_3] : memref<8x8x64xbf16, #tpu.memory_space<vmem>>, vector<8x8x64xbf16>
    %8 = vector.shape_cast %7 : vector<8x8x64xbf16> to vector<64x64xbf16>
    %c0_4 = arith.constant 0 : index
    %c0_5 = arith.constant 0 : index
    %c0_6 = arith.constant 0 : index
    %9 = vector.load %arg4[%c0_4, %c0_5, %c0_6] : memref<1x64x512xbf16, #tpu.memory_space<vmem>>, vector<1x64x512xbf16>
    %10 = vector.shape_cast %9 : vector<1x64x512xbf16> to vector<64x512xbf16>
    %cst = arith.constant dense<0.000000e+00> : vector<64x512xf32>
    %11 = tpu.matmul %8, %10, %cst {dimension_numbers = #tpu.dot_dimension_numbers<[1], [0], [0], [1], [0, 0, 1, 1], [], []>} : vector<64x64xbf16>, vector<64x512xbf16>, vector<64x512xf32> -> vector<64x512xf32>
    %c0_7 = arith.constant 0 : index
    %c0_8 = arith.constant 0 : index
    %c0_9 = arith.constant 0 : index
    %12 = vector.load %arg6[%c0_7, %c0_8, %c0_9] : memref<1x1x512xf32, #tpu.memory_space<vmem>>, vector<1x1x512xf32>
    %13 = vector.shape_cast %12 : vector<1x1x512xf32> to vector<1x512xf32>
    %14 = vector.broadcast %13 : vector<1x512xf32> to vector<64x512xf32>
    %15 = arith.addf %11, %14 : vector<64x512xf32>
    %16 = vector.shape_cast %15 : vector<64x512xf32> to vector<8x8x512xf32>
    %c0_10 = arith.constant 0 : index
    %c0_11 = arith.constant 0 : index
    %c0_12 = arith.constant 0 : index
    %17 = vector.load %arg11[%c0_10, %c0_11, %c0_12] : memref<8x8x512xf32, #tpu.memory_space<vmem>>, vector<8x8x512xf32>
    tpu.vector_store %arg11[%c0_10, %c0_11, %c0_12], %16 {strides = array<i32>} : memref<8x8x512xf32, #tpu.memory_space<vmem>>, vector<8x8x512xf32>,
    %c0_13 = arith.constant 0 : index
    %c0_14 = arith.constant 0 : index
    %c0_15 = arith.constant 0 : index
    %18 = vector.load %arg5[%c0_13, %c0_14, %c0_15] : memref<1x128x512xbf16, #tpu.memory_space<vmem>>, vector<1x128x512xbf16>
    %19 = vector.shape_cast %18 : vector<1x128x512xbf16> to vector<128x512xbf16>
    %c0_16 = arith.constant 0 : index
    %c0_17 = arith.constant 0 : index
    %20 = vector.load %arg2[%c0_16, %c0_17] : memref<8x1xi32, #tpu.memory_space<vmem>>, vector<8x1xi32>
    %c0_18 = arith.constant 0 : index
    %c0_19 = arith.constant 0 : index
    %21 = vector.load %arg9[%c0_18, %c0_19] : memref<8x128xf32, #tpu.memory_space<vmem>>, vector<8x128xf32>
    %c0_20 = arith.constant 0 : index
    %c0_21 = arith.constant 0 : index
    %22 = vector.load %arg10[%c0_20, %c0_21] : memref<8x128xf32, #tpu.memory_space<vmem>>, vector<8x128xf32>
    %c0_i32_22 = arith.constant 0 : i32
    %c2_i32_23 = arith.constant 2 : i32
    %23 = arith.muli %c2_i32_23, %c0_i32_22 : i32
    %c7_i32 = arith.constant 7 : i32
    %24 = arith.subi %c7_i32, %23 : i32
    %25 = arith.muli %arg0, %24 : i32
    %26 = arith.addi %c0_i32_22, %25 : i32
    %27 = arith.index_cast %26 : i32 to index
    %c0_24 = arith.constant 0 : index
    %c0_25 = arith.constant 0 : index
    %28 = vector.load %arg11[%27, %c0_24, %c0_25] : memref<8x8x512xf32, #tpu.memory_space<vmem>>, vector<1x8x512xf32>
    %29 = vector.shape_cast %28 : vector<1x8x512xf32> to vector<8x512xf32>
    %30 = arith.truncf %21 : vector<8x128xf32> to vector<8x128xbf16>
    %cst_26 = arith.constant dense<0.000000e+00> : vector<8x512xf32>
    %31 = tpu.matmul %30, %19, %cst_26 {dimension_numbers = #tpu.dot_dimension_numbers<[1], [0], [0], [1], [0, 0, 1, 1], [], []>} : vector<8x128xbf16>, vector<128x512xbf16>, vector<8x512xf32> -> vector<8x512xf32>
    %32 = arith.addf %29, %31 : vector<8x512xf32>
    %33 = vector.extract_strided_slice %32 {offsets = [0, 0], sizes = [8, 128], strides = [1, 1]} : vector<8x512xf32> to vector<8x128xf32>
    %cst_27 = arith.constant 5.000000e-01 : f32
    %34 = vector.broadcast %cst_27 : f32 to vector<8x128xf32>
    %35 = arith.mulf %34, %33 : vector<8x128xf32>
    %36 = math.tanh %35 : vector<8x128xf32>
    %cst_28 = arith.constant 1.000000e+00 : f32
    %37 = vector.broadcast %cst_28 : f32 to vector<8x128xf32>
    %38 = arith.addf %36, %37 : vector<8x128xf32>
    %cst_29 = arith.constant 5.000000e-01 : f32
    %39 = vector.broadcast %cst_29 : f32 to vector<8x128xf32>
    %40 = arith.mulf %39, %38 : vector<8x128xf32>
    %41 = vector.extract_strided_slice %32 {offsets = [0, 128], sizes = [8, 128], strides = [1, 1]} : vector<8x512xf32> to vector<8x128xf32>
    %cst_30 = arith.constant 5.000000e-01 : f32
    %42 = vector.broadcast %cst_30 : f32 to vector<8x128xf32>
    %43 = arith.mulf %42, %41 : vector<8x128xf32>
    %44 = math.tanh %43 : vector<8x128xf32>
    %cst_31 = arith.constant 1.000000e+00 : f32
    %45 = vector.broadcast %cst_31 : f32 to vector<8x128xf32>
    %46 = arith.addf %44, %45 : vector<8x128xf32>
    %cst_32 = arith.constant 5.000000e-01 : f32
    %47 = vector.broadcast %cst_32 : f32 to vector<8x128xf32>
    %48 = arith.mulf %47, %46 : vector<8x128xf32>
    %49 = vector.extract_strided_slice %32 {offsets = [0, 256], sizes = [8, 128], strides = [1, 1]} : vector<8x512xf32> to vector<8x128xf32>
    %50 = math.tanh %49 : vector<8x128xf32>
    %51 = vector.extract_strided_slice %32 {offsets = [0, 384], sizes = [8, 128], strides = [1, 1]} : vector<8x512xf32> to vector<8x128xf32>
    %cst_33 = arith.constant 5.000000e-01 : f32
    %52 = vector.broadcast %cst_33 : f32 to vector<8x128xf32>
    %53 = arith.mulf %52, %51 : vector<8x128xf32>
    %54 = math.tanh %53 : vector<8x128xf32>
    %cst_34 = arith.constant 1.000000e+00 : f32
    %55 = vector.broadcast %cst_34 : f32 to vector<8x128xf32>
    %56 = arith.addf %54, %55 : vector<8x128xf32>
    %cst_35 = arith.constant 5.000000e-01 : f32
    %57 = vector.broadcast %cst_35 : f32 to vector<8x128xf32>
    %58 = arith.mulf %57, %56 : vector<8x128xf32>
    %59 = arith.mulf %48, %22 : vector<8x128xf32>
    %60 = arith.mulf %40, %50 : vector<8x128xf32>
    %61 = arith.addf %59, %60 : vector<8x128xf32>
    %62 = math.tanh %61 : vector<8x128xf32>
    %63 = arith.mulf %58, %62 : vector<8x128xf32>
    %c8_i32 = arith.constant 8 : i32
    %64 = arith.muli %3, %c8_i32 : i32
    %65 = arith.addi %64, %26 : i32
    %66 = vector.broadcast %65 : i32 to vector<8x1xi32>
    %67 = arith.cmpi sgt, %20, %66 : vector<8x1xi32>
    %68 = vector.shape_cast %67 : vector<8x1xi1> to vector<8x1xi1>
    %69 = vector.broadcast %68 : vector<8x1xi1> to vector<8x128xi1>
    %cst_36 = arith.constant 0.000000e+00 : f32
    %70 = vector.broadcast %cst_36 : f32 to vector<8x128xf32>
    %71 = arith.select %69, %63, %70 : vector<8x128xi1>, vector<8x128xf32>
    %72 = arith.truncf %71 : vector<8x128xf32> to vector<8x128xbf16>
    %73 = arith.index_cast %26 : i32 to index
    %c0_37 = arith.constant 0 : index
    %c0_38 = arith.constant 0 : index
    %74 = vector.load %arg7[%73, %c0_37, %c0_38] : memref<8x8x128xbf16, #tpu.memory_space<vmem>>, vector<1x8x128xbf16>
    %75 = vector.shape_cast %74 : vector<1x8x128xbf16> to vector<8x128xbf16>
    %76 = vector.shape_cast %72 : vector<8x128xbf16> to vector<1x8x128xbf16>
    tpu.vector_store %arg7[%73, %c0_37, %c0_38], %76 {strides = array<i32>} : memref<8x8x128xbf16, #tpu.memory_space<vmem>>, vector<1x8x128xbf16>,
    %77 = arith.select %69, %63, %21 : vector<8x128xi1>, vector<8x128xf32>
    %78 = arith.select %69, %61, %22 : vector<8x128xi1>, vector<8x128xf32>
    %c1_i32 = arith.constant 1 : i32
    %c2_i32_39 = arith.constant 2 : i32
    %79 = arith.muli %c2_i32_39, %c1_i32 : i32
    %c7_i32_40 = arith.constant 7 : i32
    %80 = arith.subi %c7_i32_40, %79 : i32
    %81 = arith.muli %arg0, %80 : i32
    %82 = arith.addi %c1_i32, %81 : i32
    %83 = arith.index_cast %82 : i32 to index
    %c0_41 = arith.constant 0 : index
    %c0_42 = arith.constant 0 : index
    %84 = vector.load %arg11[%83, %c0_41, %c0_42] : memref<8x8x512xf32, #tpu.memory_space<vmem>>, vector<1x8x512xf32>
    %85 = vector.shape_cast %84 : vector<1x8x512xf32> to vector<8x512xf32>
    %86 = arith.truncf %77 : vector<8x128xf32> to vector<8x128xbf16>
    %cst_43 = arith.constant dense<0.000000e+00> : vector<8x512xf32>
    %87 = tpu.matmul %86, %19, %cst_43 {dimension_numbers = #tpu.dot_dimension_numbers<[1], [0], [0], [1], [0, 0, 1, 1], [], []>} : vector<8x128xbf16>, vector<128x512xbf16>, vector<8x512xf32> -> vector<8x512xf32>
    %88 = arith.addf %85, %87 : vector<8x512xf32>
    %89 = vector.extract_strided_slice %88 {offsets = [0, 0], sizes = [8, 128], strides = [1, 1]} : vector<8x512xf32> to vector<8x128xf32>
    %cst_44 = arith.constant 5.000000e-01 : f32
    %90 = vector.broadcast %cst_44 : f32 to vector<8x128xf32>
    %91 = arith.mulf %90, %89 : vector<8x128xf32>
    %92 = math.tanh %91 : vector<8x128xf32>
    %cst_45 = arith.constant 1.000000e+00 : f32
    %93 = vector.broadcast %cst_45 : f32 to vector<8x128xf32>
    %94 = arith.addf %92, %93 : vector<8x128xf32>
    %cst_46 = arith.constant 5.000000e-01 : f32
    %95 = vector.broadcast %cst_46 : f32 to vector<8x128xf32>
    %96 = arith.mulf %95, %94 : vector<8x128xf32>
    %97 = vector.extract_strided_slice %88 {offsets = [0, 128], sizes = [8, 128], strides = [1, 1]} : vector<8x512xf32> to vector<8x128xf32>
    %cst_47 = arith.constant 5.000000e-01 : f32
    %98 = vector.broadcast %cst_47 : f32 to vector<8x128xf32>
    %99 = arith.mulf %98, %97 : vector<8x128xf32>
    %100 = math.tanh %99 : vector<8x128xf32>
    %cst_48 = arith.constant 1.000000e+00 : f32
    %101 = vector.broadcast %cst_48 : f32 to vector<8x128xf32>
    %102 = arith.addf %100, %101 : vector<8x128xf32>
    %cst_49 = arith.constant 5.000000e-01 : f32
    %103 = vector.broadcast %cst_49 : f32 to vector<8x128xf32>
    %104 = arith.mulf %103, %102 : vector<8x128xf32>
    %105 = vector.extract_strided_slice %88 {offsets = [0, 256], sizes = [8, 128], strides = [1, 1]} : vector<8x512xf32> to vector<8x128xf32>
    %106 = math.tanh %105 : vector<8x128xf32>
    %107 = vector.extract_strided_slice %88 {offsets = [0, 384], sizes = [8, 128], strides = [1, 1]} : vector<8x512xf32> to vector<8x128xf32>
    %cst_50 = arith.constant 5.000000e-01 : f32
    %108 = vector.broadcast %cst_50 : f32 to vector<8x128xf32>
    %109 = arith.mulf %108, %107 : vector<8x128xf32>
    %110 = math.tanh %109 : vector<8x128xf32>
    %cst_51 = arith.constant 1.000000e+00 : f32
    %111 = vector.broadcast %cst_51 : f32 to vector<8x128xf32>
    %112 = arith.addf %110, %111 : vector<8x128xf32>
    %cst_52 = arith.constant 5.000000e-01 : f32
    %113 = vector.broadcast %cst_52 : f32 to vector<8x128xf32>
    %114 = arith.mulf %113, %112 : vector<8x128xf32>
    %115 = arith.mulf %104, %78 : vector<8x128xf32>
    %116 = arith.mulf %96, %106 : vector<8x128xf32>
    %117 = arith.addf %115, %116 : vector<8x128xf32>
    %118 = math.tanh %117 : vector<8x128xf32>
    %119 = arith.mulf %114, %118 : vector<8x128xf32>
    %c8_i32_53 = arith.constant 8 : i32
    %120 = arith.muli %3, %c8_i32_53 : i32
    %121 = arith.addi %120, %82 : i32
    %122 = vector.broadcast %121 : i32 to vector<8x1xi32>
    %123 = arith.cmpi sgt, %20, %122 : vector<8x1xi32>
    %124 = vector.shape_cast %123 : vector<8x1xi1> to vector<8x1xi1>
    %125 = vector.broadcast %124 : vector<8x1xi1> to vector<8x128xi1>
    %cst_54 = arith.constant 0.000000e+00 : f32
    %126 = vector.broadcast %cst_54 : f32 to vector<8x128xf32>
    %127 = arith.select %125, %119, %126 : vector<8x128xi1>, vector<8x128xf32>
    %128 = arith.truncf %127 : vector<8x128xf32> to vector<8x128xbf16>
    %129 = arith.index_cast %82 : i32 to index
    %c0_55 = arith.constant 0 : index
    %c0_56 = arith.constant 0 : index
    %130 = vector.load %arg7[%129, %c0_55, %c0_56] : memref<8x8x128xbf16, #tpu.memory_space<vmem>>, vector<1x8x128xbf16>
    %131 = vector.shape_cast %130 : vector<1x8x128xbf16> to vector<8x128xbf16>
    %132 = vector.shape_cast %128 : vector<8x128xbf16> to vector<1x8x128xbf16>
    tpu.vector_store %arg7[%129, %c0_55, %c0_56], %132 {strides = array<i32>} : memref<8x8x128xbf16, #tpu.memory_space<vmem>>, vector<1x8x128xbf16>,
    %133 = arith.select %125, %119, %77 : vector<8x128xi1>, vector<8x128xf32>
    %134 = arith.select %125, %117, %78 : vector<8x128xi1>, vector<8x128xf32>
    %c2_i32_57 = arith.constant 2 : i32
    %c2_i32_58 = arith.constant 2 : i32
    %135 = arith.muli %c2_i32_58, %c2_i32_57 : i32
    %c7_i32_59 = arith.constant 7 : i32
    %136 = arith.subi %c7_i32_59, %135 : i32
    %137 = arith.muli %arg0, %136 : i32
    %138 = arith.addi %c2_i32_57, %137 : i32
    %139 = arith.index_cast %138 : i32 to index
    %c0_60 = arith.constant 0 : index
    %c0_61 = arith.constant 0 : index
    %140 = vector.load %arg11[%139, %c0_60, %c0_61] : memref<8x8x512xf32, #tpu.memory_space<vmem>>, vector<1x8x512xf32>
    %141 = vector.shape_cast %140 : vector<1x8x512xf32> to vector<8x512xf32>
    %142 = arith.truncf %133 : vector<8x128xf32> to vector<8x128xbf16>
    %cst_62 = arith.constant dense<0.000000e+00> : vector<8x512xf32>
    %143 = tpu.matmul %142, %19, %cst_62 {dimension_numbers = #tpu.dot_dimension_numbers<[1], [0], [0], [1], [0, 0, 1, 1], [], []>} : vector<8x128xbf16>, vector<128x512xbf16>, vector<8x512xf32> -> vector<8x512xf32>
    %144 = arith.addf %141, %143 : vector<8x512xf32>
    %145 = vector.extract_strided_slice %144 {offsets = [0, 0], sizes = [8, 128], strides = [1, 1]} : vector<8x512xf32> to vector<8x128xf32>
    %cst_63 = arith.constant 5.000000e-01 : f32
    %146 = vector.broadcast %cst_63 : f32 to vector<8x128xf32>
    %147 = arith.mulf %146, %145 : vector<8x128xf32>
    %148 = math.tanh %147 : vector<8x128xf32>
    %cst_64 = arith.constant 1.000000e+00 : f32
    %149 = vector.broadcast %cst_64 : f32 to vector<8x128xf32>
    %150 = arith.addf %148, %149 : vector<8x128xf32>
    %cst_65 = arith.constant 5.000000e-01 : f32
    %151 = vector.broadcast %cst_65 : f32 to vector<8x128xf32>
    %152 = arith.mulf %151, %150 : vector<8x128xf32>
    %153 = vector.extract_strided_slice %144 {offsets = [0, 128], sizes = [8, 128], strides = [1, 1]} : vector<8x512xf32> to vector<8x128xf32>
    %cst_66 = arith.constant 5.000000e-01 : f32
    %154 = vector.broadcast %cst_66 : f32 to vector<8x128xf32>
    %155 = arith.mulf %154, %153 : vector<8x128xf32>
    %156 = math.tanh %155 : vector<8x128xf32>
    %cst_67 = arith.constant 1.000000e+00 : f32
    %157 = vector.broadcast %cst_67 : f32 to vector<8x128xf32>
    %158 = arith.addf %156, %157 : vector<8x128xf32>
    %cst_68 = arith.constant 5.000000e-01 : f32
    %159 = vector.broadcast %cst_68 : f32 to vector<8x128xf32>
    %160 = arith.mulf %159, %158 : vector<8x128xf32>
    %161 = vector.extract_strided_slice %144 {offsets = [0, 256], sizes = [8, 128], strides = [1, 1]} : vector<8x512xf32> to vector<8x128xf32>
    %162 = math.tanh %161 : vector<8x128xf32>
    %163 = vector.extract_strided_slice %144 {offsets = [0, 384], sizes = [8, 128], strides = [1, 1]} : vector<8x512xf32> to vector<8x128xf32>
    %cst_69 = arith.constant 5.000000e-01 : f32
    %164 = vector.broadcast %cst_69 : f32 to vector<8x128xf32>
    %165 = arith.mulf %164, %163 : vector<8x128xf32>
    %166 = math.tanh %165 : vector<8x128xf32>
    %cst_70 = arith.constant 1.000000e+00 : f32
    %167 = vector.broadcast %cst_70 : f32 to vector<8x128xf32>
    %168 = arith.addf %166, %167 : vector<8x128xf32>
    %cst_71 = arith.constant 5.000000e-01 : f32
    %169 = vector.broadcast %cst_71 : f32 to vector<8x128xf32>
    %170 = arith.mulf %169, %168 : vector<8x128xf32>
    %171 = arith.mulf %160, %134 : vector<8x128xf32>
    %172 = arith.mulf %152, %162 : vector<8x128xf32>
    %173 = arith.addf %171, %172 : vector<8x128xf32>
    %174 = math.tanh %173 : vector<8x128xf32>
    %175 = arith.mulf %170, %174 : vector<8x128xf32>
    %c8_i32_72 = arith.constant 8 : i32
    %176 = arith.muli %3, %c8_i32_72 : i32
    %177 = arith.addi %176, %138 : i32
    %178 = vector.broadcast %177 : i32 to vector<8x1xi32>
    %179 = arith.cmpi sgt, %20, %178 : vector<8x1xi32>
    %180 = vector.shape_cast %179 : vector<8x1xi1> to vector<8x1xi1>
    %181 = vector.broadcast %180 : vector<8x1xi1> to vector<8x128xi1>
    %cst_73 = arith.constant 0.000000e+00 : f32
    %182 = vector.broadcast %cst_73 : f32 to vector<8x128xf32>
    %183 = arith.select %181, %175, %182 : vector<8x128xi1>, vector<8x128xf32>
    %184 = arith.truncf %183 : vector<8x128xf32> to vector<8x128xbf16>
    %185 = arith.index_cast %138 : i32 to index
    %c0_74 = arith.constant 0 : index
    %c0_75 = arith.constant 0 : index
    %186 = vector.load %arg7[%185, %c0_74, %c0_75] : memref<8x8x128xbf16, #tpu.memory_space<vmem>>, vector<1x8x128xbf16>
    %187 = vector.shape_cast %186 : vector<1x8x128xbf16> to vector<8x128xbf16>
    %188 = vector.shape_cast %184 : vector<8x128xbf16> to vector<1x8x128xbf16>
    tpu.vector_store %arg7[%185, %c0_74, %c0_75], %188 {strides = array<i32>} : memref<8x8x128xbf16, #tpu.memory_space<vmem>>, vector<1x8x128xbf16>,
    %189 = arith.select %181, %175, %133 : vector<8x128xi1>, vector<8x128xf32>
    %190 = arith.select %181, %173, %134 : vector<8x128xi1>, vector<8x128xf32>
    %c3_i32 = arith.constant 3 : i32
    %c2_i32_76 = arith.constant 2 : i32
    %191 = arith.muli %c2_i32_76, %c3_i32 : i32
    %c7_i32_77 = arith.constant 7 : i32
    %192 = arith.subi %c7_i32_77, %191 : i32
    %193 = arith.muli %arg0, %192 : i32
    %194 = arith.addi %c3_i32, %193 : i32
    %195 = arith.index_cast %194 : i32 to index
    %c0_78 = arith.constant 0 : index
    %c0_79 = arith.constant 0 : index
    %196 = vector.load %arg11[%195, %c0_78, %c0_79] : memref<8x8x512xf32, #tpu.memory_space<vmem>>, vector<1x8x512xf32>
    %197 = vector.shape_cast %196 : vector<1x8x512xf32> to vector<8x512xf32>
    %198 = arith.truncf %189 : vector<8x128xf32> to vector<8x128xbf16>
    %cst_80 = arith.constant dense<0.000000e+00> : vector<8x512xf32>
    %199 = tpu.matmul %198, %19, %cst_80 {dimension_numbers = #tpu.dot_dimension_numbers<[1], [0], [0], [1], [0, 0, 1, 1], [], []>} : vector<8x128xbf16>, vector<128x512xbf16>, vector<8x512xf32> -> vector<8x512xf32>
    %200 = arith.addf %197, %199 : vector<8x512xf32>
    %201 = vector.extract_strided_slice %200 {offsets = [0, 0], sizes = [8, 128], strides = [1, 1]} : vector<8x512xf32> to vector<8x128xf32>
    %cst_81 = arith.constant 5.000000e-01 : f32
    %202 = vector.broadcast %cst_81 : f32 to vector<8x128xf32>
    %203 = arith.mulf %202, %201 : vector<8x128xf32>
    %204 = math.tanh %203 : vector<8x128xf32>
    %cst_82 = arith.constant 1.000000e+00 : f32
    %205 = vector.broadcast %cst_82 : f32 to vector<8x128xf32>
    %206 = arith.addf %204, %205 : vector<8x128xf32>
    %cst_83 = arith.constant 5.000000e-01 : f32
    %207 = vector.broadcast %cst_83 : f32 to vector<8x128xf32>
    %208 = arith.mulf %207, %206 : vector<8x128xf32>
    %209 = vector.extract_strided_slice %200 {offsets = [0, 128], sizes = [8, 128], strides = [1, 1]} : vector<8x512xf32> to vector<8x128xf32>
    %cst_84 = arith.constant 5.000000e-01 : f32
    %210 = vector.broadcast %cst_84 : f32 to vector<8x128xf32>
    %211 = arith.mulf %210, %209 : vector<8x128xf32>
    %212 = math.tanh %211 : vector<8x128xf32>
    %cst_85 = arith.constant 1.000000e+00 : f32
    %213 = vector.broadcast %cst_85 : f32 to vector<8x128xf32>
    %214 = arith.addf %212, %213 : vector<8x128xf32>
    %cst_86 = arith.constant 5.000000e-01 : f32
    %215 = vector.broadcast %cst_86 : f32 to vector<8x128xf32>
    %216 = arith.mulf %215, %214 : vector<8x128xf32>
    %217 = vector.extract_strided_slice %200 {offsets = [0, 256], sizes = [8, 128], strides = [1, 1]} : vector<8x512xf32> to vector<8x128xf32>
    %218 = math.tanh %217 : vector<8x128xf32>
    %219 = vector.extract_strided_slice %200 {offsets = [0, 384], sizes = [8, 128], strides = [1, 1]} : vector<8x512xf32> to vector<8x128xf32>
    %cst_87 = arith.constant 5.000000e-01 : f32
    %220 = vector.broadcast %cst_87 : f32 to vector<8x128xf32>
    %221 = arith.mulf %220, %219 : vector<8x128xf32>
    %222 = math.tanh %221 : vector<8x128xf32>
    %cst_88 = arith.constant 1.000000e+00 : f32
    %223 = vector.broadcast %cst_88 : f32 to vector<8x128xf32>
    %224 = arith.addf %222, %223 : vector<8x128xf32>
    %cst_89 = arith.constant 5.000000e-01 : f32
    %225 = vector.broadcast %cst_89 : f32 to vector<8x128xf32>
    %226 = arith.mulf %225, %224 : vector<8x128xf32>
    %227 = arith.mulf %216, %190 : vector<8x128xf32>
    %228 = arith.mulf %208, %218 : vector<8x128xf32>
    %229 = arith.addf %227, %228 : vector<8x128xf32>
    %230 = math.tanh %229 : vector<8x128xf32>
    %231 = arith.mulf %226, %230 : vector<8x128xf32>
    %c8_i32_90 = arith.constant 8 : i32
    %232 = arith.muli %3, %c8_i32_90 : i32
    %233 = arith.addi %232, %194 : i32
    %234 = vector.broadcast %233 : i32 to vector<8x1xi32>
    %235 = arith.cmpi sgt, %20, %234 : vector<8x1xi32>
    %236 = vector.shape_cast %235 : vector<8x1xi1> to vector<8x1xi1>
    %237 = vector.broadcast %236 : vector<8x1xi1> to vector<8x128xi1>
    %cst_91 = arith.constant 0.000000e+00 : f32
    %238 = vector.broadcast %cst_91 : f32 to vector<8x128xf32>
    %239 = arith.select %237, %231, %238 : vector<8x128xi1>, vector<8x128xf32>
    %240 = arith.truncf %239 : vector<8x128xf32> to vector<8x128xbf16>
    %241 = arith.index_cast %194 : i32 to index
    %c0_92 = arith.constant 0 : index
    %c0_93 = arith.constant 0 : index
    %242 = vector.load %arg7[%241, %c0_92, %c0_93] : memref<8x8x128xbf16, #tpu.memory_space<vmem>>, vector<1x8x128xbf16>
    %243 = vector.shape_cast %242 : vector<1x8x128xbf16> to vector<8x128xbf16>
    %244 = vector.shape_cast %240 : vector<8x128xbf16> to vector<1x8x128xbf16>
    tpu.vector_store %arg7[%241, %c0_92, %c0_93], %244 {strides = array<i32>} : memref<8x8x128xbf16, #tpu.memory_space<vmem>>, vector<1x8x128xbf16>,
    %245 = arith.select %237, %231, %189 : vector<8x128xi1>, vector<8x128xf32>
    %246 = arith.select %237, %229, %190 : vector<8x128xi1>, vector<8x128xf32>
    %c4_i32 = arith.constant 4 : i32
    %c2_i32_94 = arith.constant 2 : i32
    %247 = arith.muli %c2_i32_94, %c4_i32 : i32
    %c7_i32_95 = arith.constant 7 : i32
    %248 = arith.subi %c7_i32_95, %247 : i32
    %249 = arith.muli %arg0, %248 : i32
    %250 = arith.addi %c4_i32, %249 : i32
    %251 = arith.index_cast %250 : i32 to index
    %c0_96 = arith.constant 0 : index
    %c0_97 = arith.constant 0 : index
    %252 = vector.load %arg11[%251, %c0_96, %c0_97] : memref<8x8x512xf32, #tpu.memory_space<vmem>>, vector<1x8x512xf32>
    %253 = vector.shape_cast %252 : vector<1x8x512xf32> to vector<8x512xf32>
    %254 = arith.truncf %245 : vector<8x128xf32> to vector<8x128xbf16>
    %cst_98 = arith.constant dense<0.000000e+00> : vector<8x512xf32>
    %255 = tpu.matmul %254, %19, %cst_98 {dimension_numbers = #tpu.dot_dimension_numbers<[1], [0], [0], [1], [0, 0, 1, 1], [], []>} : vector<8x128xbf16>, vector<128x512xbf16>, vector<8x512xf32> -> vector<8x512xf32>
    %256 = arith.addf %253, %255 : vector<8x512xf32>
    %257 = vector.extract_strided_slice %256 {offsets = [0, 0], sizes = [8, 128], strides = [1, 1]} : vector<8x512xf32> to vector<8x128xf32>
    %cst_99 = arith.constant 5.000000e-01 : f32
    %258 = vector.broadcast %cst_99 : f32 to vector<8x128xf32>
    %259 = arith.mulf %258, %257 : vector<8x128xf32>
    %260 = math.tanh %259 : vector<8x128xf32>
    %cst_100 = arith.constant 1.000000e+00 : f32
    %261 = vector.broadcast %cst_100 : f32 to vector<8x128xf32>
    %262 = arith.addf %260, %261 : vector<8x128xf32>
    %cst_101 = arith.constant 5.000000e-01 : f32
    %263 = vector.broadcast %cst_101 : f32 to vector<8x128xf32>
    %264 = arith.mulf %263, %262 : vector<8x128xf32>
    %265 = vector.extract_strided_slice %256 {offsets = [0, 128], sizes = [8, 128], strides = [1, 1]} : vector<8x512xf32> to vector<8x128xf32>
    %cst_102 = arith.constant 5.000000e-01 : f32
    %266 = vector.broadcast %cst_102 : f32 to vector<8x128xf32>
    %267 = arith.mulf %266, %265 : vector<8x128xf32>
    %268 = math.tanh %267 : vector<8x128xf32>
    %cst_103 = arith.constant 1.000000e+00 : f32
    %269 = vector.broadcast %cst_103 : f32 to vector<8x128xf32>
    %270 = arith.addf %268, %269 : vector<8x128xf32>
    %cst_104 = arith.constant 5.000000e-01 : f32
    %271 = vector.broadcast %cst_104 : f32 to vector<8x128xf32>
    %272 = arith.mulf %271, %270 : vector<8x128xf32>
    %273 = vector.extract_strided_slice %256 {offsets = [0, 256], sizes = [8, 128], strides = [1, 1]} : vector<8x512xf32> to vector<8x128xf32>
    %274 = math.tanh %273 : vector<8x128xf32>
    %275 = vector.extract_strided_slice %256 {offsets = [0, 384], sizes = [8, 128], strides = [1, 1]} : vector<8x512xf32> to vector<8x128xf32>
    %cst_105 = arith.constant 5.000000e-01 : f32
    %276 = vector.broadcast %cst_105 : f32 to vector<8x128xf32>
    %277 = arith.mulf %276, %275 : vector<8x128xf32>
    %278 = math.tanh %277 : vector<8x128xf32>
    %cst_106 = arith.constant 1.000000e+00 : f32
    %279 = vector.broadcast %cst_106 : f32 to vector<8x128xf32>
    %280 = arith.addf %278, %279 : vector<8x128xf32>
    %cst_107 = arith.constant 5.000000e-01 : f32
    %281 = vector.broadcast %cst_107 : f32 to vector<8x128xf32>
    %282 = arith.mulf %281, %280 : vector<8x128xf32>
    %283 = arith.mulf %272, %246 : vector<8x128xf32>
    %284 = arith.mulf %264, %274 : vector<8x128xf32>
    %285 = arith.addf %283, %284 : vector<8x128xf32>
    %286 = math.tanh %285 : vector<8x128xf32>
    %287 = arith.mulf %282, %286 : vector<8x128xf32>
    %c8_i32_108 = arith.constant 8 : i32
    %288 = arith.muli %3, %c8_i32_108 : i32
    %289 = arith.addi %288, %250 : i32
    %290 = vector.broadcast %289 : i32 to vector<8x1xi32>
    %291 = arith.cmpi sgt, %20, %290 : vector<8x1xi32>
    %292 = vector.shape_cast %291 : vector<8x1xi1> to vector<8x1xi1>
    %293 = vector.broadcast %292 : vector<8x1xi1> to vector<8x128xi1>
    %cst_109 = arith.constant 0.000000e+00 : f32
    %294 = vector.broadcast %cst_109 : f32 to vector<8x128xf32>
    %295 = arith.select %293, %287, %294 : vector<8x128xi1>, vector<8x128xf32>
    %296 = arith.truncf %295 : vector<8x128xf32> to vector<8x128xbf16>
    %297 = arith.index_cast %250 : i32 to index
    %c0_110 = arith.constant 0 : index
    %c0_111 = arith.constant 0 : index
    %298 = vector.load %arg7[%297, %c0_110, %c0_111] : memref<8x8x128xbf16, #tpu.memory_space<vmem>>, vector<1x8x128xbf16>
    %299 = vector.shape_cast %298 : vector<1x8x128xbf16> to vector<8x128xbf16>
    %300 = vector.shape_cast %296 : vector<8x128xbf16> to vector<1x8x128xbf16>
    tpu.vector_store %arg7[%297, %c0_110, %c0_111], %300 {strides = array<i32>} : memref<8x8x128xbf16, #tpu.memory_space<vmem>>, vector<1x8x128xbf16>,
    %301 = arith.select %293, %287, %245 : vector<8x128xi1>, vector<8x128xf32>
    %302 = arith.select %293, %285, %246 : vector<8x128xi1>, vector<8x128xf32>
    %c5_i32 = arith.constant 5 : i32
    %c2_i32_112 = arith.constant 2 : i32
    %303 = arith.muli %c2_i32_112, %c5_i32 : i32
    %c7_i32_113 = arith.constant 7 : i32
    %304 = arith.subi %c7_i32_113, %303 : i32
    %305 = arith.muli %arg0, %304 : i32
    %306 = arith.addi %c5_i32, %305 : i32
    %307 = arith.index_cast %306 : i32 to index
    %c0_114 = arith.constant 0 : index
    %c0_115 = arith.constant 0 : index
    %308 = vector.load %arg11[%307, %c0_114, %c0_115] : memref<8x8x512xf32, #tpu.memory_space<vmem>>, vector<1x8x512xf32>
    %309 = vector.shape_cast %308 : vector<1x8x512xf32> to vector<8x512xf32>
    %310 = arith.truncf %301 : vector<8x128xf32> to vector<8x128xbf16>
    %cst_116 = arith.constant dense<0.000000e+00> : vector<8x512xf32>
    %311 = tpu.matmul %310, %19, %cst_116 {dimension_numbers = #tpu.dot_dimension_numbers<[1], [0], [0], [1], [0, 0, 1, 1], [], []>} : vector<8x128xbf16>, vector<128x512xbf16>, vector<8x512xf32> -> vector<8x512xf32>
    %312 = arith.addf %309, %311 : vector<8x512xf32>
    %313 = vector.extract_strided_slice %312 {offsets = [0, 0], sizes = [8, 128], strides = [1, 1]} : vector<8x512xf32> to vector<8x128xf32>
    %cst_117 = arith.constant 5.000000e-01 : f32
    %314 = vector.broadcast %cst_117 : f32 to vector<8x128xf32>
    %315 = arith.mulf %314, %313 : vector<8x128xf32>
    %316 = math.tanh %315 : vector<8x128xf32>
    %cst_118 = arith.constant 1.000000e+00 : f32
    %317 = vector.broadcast %cst_118 : f32 to vector<8x128xf32>
    %318 = arith.addf %316, %317 : vector<8x128xf32>
    %cst_119 = arith.constant 5.000000e-01 : f32
    %319 = vector.broadcast %cst_119 : f32 to vector<8x128xf32>
    %320 = arith.mulf %319, %318 : vector<8x128xf32>
    %321 = vector.extract_strided_slice %312 {offsets = [0, 128], sizes = [8, 128], strides = [1, 1]} : vector<8x512xf32> to vector<8x128xf32>
    %cst_120 = arith.constant 5.000000e-01 : f32
    %322 = vector.broadcast %cst_120 : f32 to vector<8x128xf32>
    %323 = arith.mulf %322, %321 : vector<8x128xf32>
    %324 = math.tanh %323 : vector<8x128xf32>
    %cst_121 = arith.constant 1.000000e+00 : f32
    %325 = vector.broadcast %cst_121 : f32 to vector<8x128xf32>
    %326 = arith.addf %324, %325 : vector<8x128xf32>
    %cst_122 = arith.constant 5.000000e-01 : f32
    %327 = vector.broadcast %cst_122 : f32 to vector<8x128xf32>
    %328 = arith.mulf %327, %326 : vector<8x128xf32>
    %329 = vector.extract_strided_slice %312 {offsets = [0, 256], sizes = [8, 128], strides = [1, 1]} : vector<8x512xf32> to vector<8x128xf32>
    %330 = math.tanh %329 : vector<8x128xf32>
    %331 = vector.extract_strided_slice %312 {offsets = [0, 384], sizes = [8, 128], strides = [1, 1]} : vector<8x512xf32> to vector<8x128xf32>
    %cst_123 = arith.constant 5.000000e-01 : f32
    %332 = vector.broadcast %cst_123 : f32 to vector<8x128xf32>
    %333 = arith.mulf %332, %331 : vector<8x128xf32>
    %334 = math.tanh %333 : vector<8x128xf32>
    %cst_124 = arith.constant 1.000000e+00 : f32
    %335 = vector.broadcast %cst_124 : f32 to vector<8x128xf32>
    %336 = arith.addf %334, %335 : vector<8x128xf32>
    %cst_125 = arith.constant 5.000000e-01 : f32
    %337 = vector.broadcast %cst_125 : f32 to vector<8x128xf32>
    %338 = arith.mulf %337, %336 : vector<8x128xf32>
    %339 = arith.mulf %328, %302 : vector<8x128xf32>
    %340 = arith.mulf %320, %330 : vector<8x128xf32>
    %341 = arith.addf %339, %340 : vector<8x128xf32>
    %342 = math.tanh %341 : vector<8x128xf32>
    %343 = arith.mulf %338, %342 : vector<8x128xf32>
    %c8_i32_126 = arith.constant 8 : i32
    %344 = arith.muli %3, %c8_i32_126 : i32
    %345 = arith.addi %344, %306 : i32
    %346 = vector.broadcast %345 : i32 to vector<8x1xi32>
    %347 = arith.cmpi sgt, %20, %346 : vector<8x1xi32>
    %348 = vector.shape_cast %347 : vector<8x1xi1> to vector<8x1xi1>
    %349 = vector.broadcast %348 : vector<8x1xi1> to vector<8x128xi1>
    %cst_127 = arith.constant 0.000000e+00 : f32
    %350 = vector.broadcast %cst_127 : f32 to vector<8x128xf32>
    %351 = arith.select %349, %343, %350 : vector<8x128xi1>, vector<8x128xf32>
    %352 = arith.truncf %351 : vector<8x128xf32> to vector<8x128xbf16>
    %353 = arith.index_cast %306 : i32 to index
    %c0_128 = arith.constant 0 : index
    %c0_129 = arith.constant 0 : index
    %354 = vector.load %arg7[%353, %c0_128, %c0_129] : memref<8x8x128xbf16, #tpu.memory_space<vmem>>, vector<1x8x128xbf16>
    %355 = vector.shape_cast %354 : vector<1x8x128xbf16> to vector<8x128xbf16>
    %356 = vector.shape_cast %352 : vector<8x128xbf16> to vector<1x8x128xbf16>
    tpu.vector_store %arg7[%353, %c0_128, %c0_129], %356 {strides = array<i32>} : memref<8x8x128xbf16, #tpu.memory_space<vmem>>, vector<1x8x128xbf16>,
    %357 = arith.select %349, %343, %301 : vector<8x128xi1>, vector<8x128xf32>
    %358 = arith.select %349, %341, %302 : vector<8x128xi1>, vector<8x128xf32>
    %c6_i32 = arith.constant 6 : i32
    %c2_i32_130 = arith.constant 2 : i32
    %359 = arith.muli %c2_i32_130, %c6_i32 : i32
    %c7_i32_131 = arith.constant 7 : i32
    %360 = arith.subi %c7_i32_131, %359 : i32
    %361 = arith.muli %arg0, %360 : i32
    %362 = arith.addi %c6_i32, %361 : i32
    %363 = arith.index_cast %362 : i32 to index
    %c0_132 = arith.constant 0 : index
    %c0_133 = arith.constant 0 : index
    %364 = vector.load %arg11[%363, %c0_132, %c0_133] : memref<8x8x512xf32, #tpu.memory_space<vmem>>, vector<1x8x512xf32>
    %365 = vector.shape_cast %364 : vector<1x8x512xf32> to vector<8x512xf32>
    %366 = arith.truncf %357 : vector<8x128xf32> to vector<8x128xbf16>
    %cst_134 = arith.constant dense<0.000000e+00> : vector<8x512xf32>
    %367 = tpu.matmul %366, %19, %cst_134 {dimension_numbers = #tpu.dot_dimension_numbers<[1], [0], [0], [1], [0, 0, 1, 1], [], []>} : vector<8x128xbf16>, vector<128x512xbf16>, vector<8x512xf32> -> vector<8x512xf32>
    %368 = arith.addf %365, %367 : vector<8x512xf32>
    %369 = vector.extract_strided_slice %368 {offsets = [0, 0], sizes = [8, 128], strides = [1, 1]} : vector<8x512xf32> to vector<8x128xf32>
    %cst_135 = arith.constant 5.000000e-01 : f32
    %370 = vector.broadcast %cst_135 : f32 to vector<8x128xf32>
    %371 = arith.mulf %370, %369 : vector<8x128xf32>
    %372 = math.tanh %371 : vector<8x128xf32>
    %cst_136 = arith.constant 1.000000e+00 : f32
    %373 = vector.broadcast %cst_136 : f32 to vector<8x128xf32>
    %374 = arith.addf %372, %373 : vector<8x128xf32>
    %cst_137 = arith.constant 5.000000e-01 : f32
    %375 = vector.broadcast %cst_137 : f32 to vector<8x128xf32>
    %376 = arith.mulf %375, %374 : vector<8x128xf32>
    %377 = vector.extract_strided_slice %368 {offsets = [0, 128], sizes = [8, 128], strides = [1, 1]} : vector<8x512xf32> to vector<8x128xf32>
    %cst_138 = arith.constant 5.000000e-01 : f32
    %378 = vector.broadcast %cst_138 : f32 to vector<8x128xf32>
    %379 = arith.mulf %378, %377 : vector<8x128xf32>
    %380 = math.tanh %379 : vector<8x128xf32>
    %cst_139 = arith.constant 1.000000e+00 : f32
    %381 = vector.broadcast %cst_139 : f32 to vector<8x128xf32>
    %382 = arith.addf %380, %381 : vector<8x128xf32>
    %cst_140 = arith.constant 5.000000e-01 : f32
    %383 = vector.broadcast %cst_140 : f32 to vector<8x128xf32>
    %384 = arith.mulf %383, %382 : vector<8x128xf32>
    %385 = vector.extract_strided_slice %368 {offsets = [0, 256], sizes = [8, 128], strides = [1, 1]} : vector<8x512xf32> to vector<8x128xf32>
    %386 = math.tanh %385 : vector<8x128xf32>
    %387 = vector.extract_strided_slice %368 {offsets = [0, 384], sizes = [8, 128], strides = [1, 1]} : vector<8x512xf32> to vector<8x128xf32>
    %cst_141 = arith.constant 5.000000e-01 : f32
    %388 = vector.broadcast %cst_141 : f32 to vector<8x128xf32>
    %389 = arith.mulf %388, %387 : vector<8x128xf32>
    %390 = math.tanh %389 : vector<8x128xf32>
    %cst_142 = arith.constant 1.000000e+00 : f32
    %391 = vector.broadcast %cst_142 : f32 to vector<8x128xf32>
    %392 = arith.addf %390, %391 : vector<8x128xf32>
    %cst_143 = arith.constant 5.000000e-01 : f32
    %393 = vector.broadcast %cst_143 : f32 to vector<8x128xf32>
    %394 = arith.mulf %393, %392 : vector<8x128xf32>
    %395 = arith.mulf %384, %358 : vector<8x128xf32>
    %396 = arith.mulf %376, %386 : vector<8x128xf32>
    %397 = arith.addf %395, %396 : vector<8x128xf32>
    %398 = math.tanh %397 : vector<8x128xf32>
    %399 = arith.mulf %394, %398 : vector<8x128xf32>
    %c8_i32_144 = arith.constant 8 : i32
    %400 = arith.muli %3, %c8_i32_144 : i32
    %401 = arith.addi %400, %362 : i32
    %402 = vector.broadcast %401 : i32 to vector<8x1xi32>
    %403 = arith.cmpi sgt, %20, %402 : vector<8x1xi32>
    %404 = vector.shape_cast %403 : vector<8x1xi1> to vector<8x1xi1>
    %405 = vector.broadcast %404 : vector<8x1xi1> to vector<8x128xi1>
    %cst_145 = arith.constant 0.000000e+00 : f32
    %406 = vector.broadcast %cst_145 : f32 to vector<8x128xf32>
    %407 = arith.select %405, %399, %406 : vector<8x128xi1>, vector<8x128xf32>
    %408 = arith.truncf %407 : vector<8x128xf32> to vector<8x128xbf16>
    %409 = arith.index_cast %362 : i32 to index
    %c0_146 = arith.constant 0 : index
    %c0_147 = arith.constant 0 : index
    %410 = vector.load %arg7[%409, %c0_146, %c0_147] : memref<8x8x128xbf16, #tpu.memory_space<vmem>>, vector<1x8x128xbf16>
    %411 = vector.shape_cast %410 : vector<1x8x128xbf16> to vector<8x128xbf16>
    %412 = vector.shape_cast %408 : vector<8x128xbf16> to vector<1x8x128xbf16>
    tpu.vector_store %arg7[%409, %c0_146, %c0_147], %412 {strides = array<i32>} : memref<8x8x128xbf16, #tpu.memory_space<vmem>>, vector<1x8x128xbf16>,
    %413 = arith.select %405, %399, %357 : vector<8x128xi1>, vector<8x128xf32>
    %414 = arith.select %405, %397, %358 : vector<8x128xi1>, vector<8x128xf32>
    %c7_i32_148 = arith.constant 7 : i32
    %c2_i32_149 = arith.constant 2 : i32
    %415 = arith.muli %c2_i32_149, %c7_i32_148 : i32
    %c7_i32_150 = arith.constant 7 : i32
    %416 = arith.subi %c7_i32_150, %415 : i32
    %417 = arith.muli %arg0, %416 : i32
    %418 = arith.addi %c7_i32_148, %417 : i32
    %419 = arith.index_cast %418 : i32 to index
    %c0_151 = arith.constant 0 : index
    %c0_152 = arith.constant 0 : index
    %420 = vector.load %arg11[%419, %c0_151, %c0_152] : memref<8x8x512xf32, #tpu.memory_space<vmem>>, vector<1x8x512xf32>
    %421 = vector.shape_cast %420 : vector<1x8x512xf32> to vector<8x512xf32>
    %422 = arith.truncf %413 : vector<8x128xf32> to vector<8x128xbf16>
    %cst_153 = arith.constant dense<0.000000e+00> : vector<8x512xf32>
    %423 = tpu.matmul %422, %19, %cst_153 {dimension_numbers = #tpu.dot_dimension_numbers<[1], [0], [0], [1], [0, 0, 1, 1], [], []>} : vector<8x128xbf16>, vector<128x512xbf16>, vector<8x512xf32> -> vector<8x512xf32>
    %424 = arith.addf %421, %423 : vector<8x512xf32>
    %425 = vector.extract_strided_slice %424 {offsets = [0, 0], sizes = [8, 128], strides = [1, 1]} : vector<8x512xf32> to vector<8x128xf32>
    %cst_154 = arith.constant 5.000000e-01 : f32
    %426 = vector.broadcast %cst_154 : f32 to vector<8x128xf32>
    %427 = arith.mulf %426, %425 : vector<8x128xf32>
    %428 = math.tanh %427 : vector<8x128xf32>
    %cst_155 = arith.constant 1.000000e+00 : f32
    %429 = vector.broadcast %cst_155 : f32 to vector<8x128xf32>
    %430 = arith.addf %428, %429 : vector<8x128xf32>
    %cst_156 = arith.constant 5.000000e-01 : f32
    %431 = vector.broadcast %cst_156 : f32 to vector<8x128xf32>
    %432 = arith.mulf %431, %430 : vector<8x128xf32>
    %433 = vector.extract_strided_slice %424 {offsets = [0, 128], sizes = [8, 128], strides = [1, 1]} : vector<8x512xf32> to vector<8x128xf32>
    %cst_157 = arith.constant 5.000000e-01 : f32
    %434 = vector.broadcast %cst_157 : f32 to vector<8x128xf32>
    %435 = arith.mulf %434, %433 : vector<8x128xf32>
    %436 = math.tanh %435 : vector<8x128xf32>
    %cst_158 = arith.constant 1.000000e+00 : f32
    %437 = vector.broadcast %cst_158 : f32 to vector<8x128xf32>
    %438 = arith.addf %436, %437 : vector<8x128xf32>
    %cst_159 = arith.constant 5.000000e-01 : f32
    %439 = vector.broadcast %cst_159 : f32 to vector<8x128xf32>
    %440 = arith.mulf %439, %438 : vector<8x128xf32>
    %441 = vector.extract_strided_slice %424 {offsets = [0, 256], sizes = [8, 128], strides = [1, 1]} : vector<8x512xf32> to vector<8x128xf32>
    %442 = math.tanh %441 : vector<8x128xf32>
    %443 = vector.extract_strided_slice %424 {offsets = [0, 384], sizes = [8, 128], strides = [1, 1]} : vector<8x512xf32> to vector<8x128xf32>
    %cst_160 = arith.constant 5.000000e-01 : f32
    %444 = vector.broadcast %cst_160 : f32 to vector<8x128xf32>
    %445 = arith.mulf %444, %443 : vector<8x128xf32>
    %446 = math.tanh %445 : vector<8x128xf32>
    %cst_161 = arith.constant 1.000000e+00 : f32
    %447 = vector.broadcast %cst_161 : f32 to vector<8x128xf32>
    %448 = arith.addf %446, %447 : vector<8x128xf32>
    %cst_162 = arith.constant 5.000000e-01 : f32
    %449 = vector.broadcast %cst_162 : f32 to vector<8x128xf32>
    %450 = arith.mulf %449, %448 : vector<8x128xf32>
    %451 = arith.mulf %440, %414 : vector<8x128xf32>
    %452 = arith.mulf %432, %442 : vector<8x128xf32>
    %453 = arith.addf %451, %452 : vector<8x128xf32>
    %454 = math.tanh %453 : vector<8x128xf32>
    %455 = arith.mulf %450, %454 : vector<8x128xf32>
    %c8_i32_163 = arith.constant 8 : i32
    %456 = arith.muli %3, %c8_i32_163 : i32
    %457 = arith.addi %456, %418 : i32
    %458 = vector.broadcast %457 : i32 to vector<8x1xi32>
    %459 = arith.cmpi sgt, %20, %458 : vector<8x1xi32>
    %460 = vector.shape_cast %459 : vector<8x1xi1> to vector<8x1xi1>
    %461 = vector.broadcast %460 : vector<8x1xi1> to vector<8x128xi1>
    %cst_164 = arith.constant 0.000000e+00 : f32
    %462 = vector.broadcast %cst_164 : f32 to vector<8x128xf32>
    %463 = arith.select %461, %455, %462 : vector<8x128xi1>, vector<8x128xf32>
    %464 = arith.truncf %463 : vector<8x128xf32> to vector<8x128xbf16>
    %465 = arith.index_cast %418 : i32 to index
    %c0_165 = arith.constant 0 : index
    %c0_166 = arith.constant 0 : index
    %466 = vector.load %arg7[%465, %c0_165, %c0_166] : memref<8x8x128xbf16, #tpu.memory_space<vmem>>, vector<1x8x128xbf16>
    %467 = vector.shape_cast %466 : vector<1x8x128xbf16> to vector<8x128xbf16>
    %468 = vector.shape_cast %464 : vector<8x128xbf16> to vector<1x8x128xbf16>
    tpu.vector_store %arg7[%465, %c0_165, %c0_166], %468 {strides = array<i32>} : memref<8x8x128xbf16, #tpu.memory_space<vmem>>, vector<1x8x128xbf16>,
    %469 = arith.select %461, %455, %413 : vector<8x128xi1>, vector<8x128xf32>
    %470 = arith.select %461, %453, %414 : vector<8x128xi1>, vector<8x128xf32>
    %c8_i32_167 = arith.constant 8 : i32
    %c0_168 = arith.constant 0 : index
    %c0_169 = arith.constant 0 : index
    %471 = vector.load %arg9[%c0_168, %c0_169] : memref<8x128xf32, #tpu.memory_space<vmem>>, vector<8x128xf32>
    tpu.vector_store %arg9[%c0_168, %c0_169], %469 {strides = array<i32>} : memref<8x128xf32, #tpu.memory_space<vmem>>, vector<8x128xf32>,
    %c0_170 = arith.constant 0 : index
    %c0_171 = arith.constant 0 : index
    %472 = vector.load %arg10[%c0_170, %c0_171] : memref<8x128xf32, #tpu.memory_space<vmem>>, vector<8x128xf32>
    tpu.vector_store %arg10[%c0_170, %c0_171], %470 {strides = array<i32>} : memref<8x128xf32, #tpu.memory_space<vmem>>, vector<8x128xf32>,
    %c0_i32_172 = arith.constant 0 : i32
    %473 = arith.cmpi eq, %arg1, %c0_i32_172 : i32
    %474 = arith.extui %473 : i1 to i32
    %c0_i32_173 = arith.constant 0 : i32
    %475 = arith.cmpi ne, %474, %c0_i32_173 : i32
    scf.if %475 {
      %c0_174 = arith.constant 0 : index
      %c0_175 = arith.constant 0 : index
      %476 = vector.load %arg8[%c0_174, %c0_175] : memref<8x128xf32, #tpu.memory_space<vmem>>, vector<8x128xf32>
      tpu.vector_store %arg8[%c0_174, %c0_175], %469 {strides = array<i32>} : memref<8x128xf32, #tpu.memory_space<vmem>>, vector<8x128xf32>,
    } else {
    }
    return
  }
  func.func @transform_0(%arg0: i32, %arg1: i32) -> (i32, i32) {
    %c0_i32 = arith.constant 0 : i32
    %c0_i32_0 = arith.constant 0 : i32
    %c0_i32_1 = arith.constant 0 : i32
    return %c0_i32, %c0_i32_0 : i32, i32
  }
  func.func @transform_1(%arg0: i32, %arg1: i32) -> (i32, i32, i32) {
    %c2_i32 = arith.constant 2 : i32
    %0 = arith.muli %c2_i32, %arg1 : i32
    %c0_i32 = arith.constant 0 : i32
    %1 = arith.subi %c0_i32, %0 : i32
    %2 = arith.muli %arg0, %1 : i32
    %3 = arith.addi %arg1, %2 : i32
    %c0_i32_0 = arith.constant 0 : i32
    %c0_i32_1 = arith.constant 0 : i32
    %c0_i32_2 = arith.constant 0 : i32
    return %3, %c0_i32_0, %c0_i32_1 : i32, i32, i32
  }
  func.func @transform_2(%arg0: i32, %arg1: i32) -> (i32, i32, i32) {
    %c0_i32 = arith.constant 0 : i32
    %c0_i32_0 = arith.constant 0 : i32
    %c0_i32_1 = arith.constant 0 : i32
    return %arg0, %c0_i32, %c0_i32_0 : i32, i32, i32
  }
  func.func @transform_3(%arg0: i32, %arg1: i32) -> (i32, i32, i32) {
    %c0_i32 = arith.constant 0 : i32
    %c0_i32_0 = arith.constant 0 : i32
    %c0_i32_1 = arith.constant 0 : i32
    return %arg0, %c0_i32, %c0_i32_0 : i32, i32, i32
  }
  func.func @transform_4(%arg0: i32, %arg1: i32) -> (i32, i32, i32) {
    %c0_i32 = arith.constant 0 : i32
    %c0_i32_0 = arith.constant 0 : i32
    %c0_i32_1 = arith.constant 0 : i32
    return %arg0, %c0_i32, %c0_i32_0 : i32, i32, i32
  }
  func.func @transform_5(%arg0: i32, %arg1: i32) -> (i32, i32, i32) {
    %c2_i32 = arith.constant 2 : i32
    %0 = arith.muli %c2_i32, %arg1 : i32
    %c0_i32 = arith.constant 0 : i32
    %1 = arith.subi %c0_i32, %0 : i32
    %2 = arith.muli %arg0, %1 : i32
    %3 = arith.addi %arg1, %2 : i32
    %c0_i32_0 = arith.constant 0 : i32
    %c0_i32_1 = arith.constant 0 : i32
    return %3, %c0_i32_0, %arg0 : i32, i32, i32
  }
  func.func @transform_6(%arg0: i32, %arg1: i32) -> (i32, i32) {
    %c0_i32 = arith.constant 0 : i32
    %c0_i32_0 = arith.constant 0 : i32
    return %c0_i32, %arg0 : i32, i32
  }
}

</mosaic_0001>

<bundles_post_ra>
// kernel: tpu_custom_call.1
= control target key start
LH: loop header
LB: loop body
LE: loop exit
PB: predicated region body
PF: predicated region fallthrough
CT: control target
= control target key end

     0   :  { %s3567_s0 = inlined_call_operand.vmem [shape: s32[8,1], index: 0, kind: input, shape index: {}]   ;;  %s3568_s1 = inlined_call_operand.hbm [shape: bf16[8,8,64], index: 1, kind: input, shape index: {}]   ;;  %s3569_s2 = inlined_call_operand.hbm [shape: bf16[2,64,512], index: 2, kind: input, shape index: {}]   ;;  %s3570_s3 = inlined_call_operand.hbm [shape: bf16[2,128,512], index: 3, kind: input, shape index: {}]   ;;  %s3571_s4 = inlined_call_operand.vmem [shape: f32[2,1,512], index: 4, kind: input, shape index: {}]   ;;  %s3572_s5 = inlined_call_operand.hbm [shape: bf16[8,8,256], index: 5, kind: output, shape index: {0}]   ;;  %s3573_s6 = inlined_call_operand.hbm [shape: f32[8,256], index: 6, kind: output, shape index: {1}]  }
   0x1   :  { %3576 = sst [smem:[#allocation21_spill]] %s3569_s2 }
   0x2   :  { %12 = vsyncpa [#allocation6], 0 }
   0x3   :  { %14 = vsyncpa [#allocation6 + $0x1], 0 }
   0x4   :  { %15 = vsyncpa [#allocation9], 0 }
   0x5   :  { %17 = vsyncpa [#allocation9 + $0x1], 0 }
   0x6   :  { %18 = vsyncpa [#allocation7], 0 }
   0x7   :  { %20 = vsyncpa [#allocation7 + $0x1], 0 }
   0x8   :  { %21 = vsyncpa [#allocation13], 0 }
   0x9   :  { %23 = vsyncpa [#allocation13 + $0x1], 0  ;;  %s2784_s21 = smov 0   ;;  %s2786_s22 = smov 0  }
   0xa   :  { %s2788_s23 = smov 0   ;;  %s2790_s24 = smov 0  }
   0xb   :  { %s2792_s25 = smov 0   ;;  %s2794_s26 = smov 0  }
   0xc LB: > { %3577 = sst [smem:[#allocation18_spill]] %s2725_s23  ;;  %s2815_s27 = sadd.s32 4294967295, %s2737_s26   ;;  %s2737_s26 = sphi %s2794_s26, %s29_s26   ;;  %s2733_s25 = sphi %s2792_s25, %s3593_s25   ;;  %s2729_s24 = sphi %s2790_s24, %s3592_s24   ;;  %s2725_s23 = sphi %s2788_s23, %s3588_s23   ;;  %s2721_s22 = sphi %s2786_s22, %s3591_s22   ;;  %s2717_s21 = sphi %s2784_s21, %s3590_s21  }
   0xd   : > { %s1991_s28 = sadd.s32 4294967294, %s2737_s26   ;;  %s41_s29 = sadd.s32 1, %s2733_s25 }
   0xe   : > { %s103_s30 = sadd.s32 1, %s2725_s23  ;;  %p43_p0 = scmp.ge.s32.totalorder %s41_s29, 2 }
   0xf   : > { %p110_p1 = scmp.ne.s32.totalorder %s2725_s23, %s2721_s22  ;;  %p111_p2 = scmp.eq.s32.totalorder %s2737_s26, 0 }
  0x10   : > { %p116_p3 = scmp.ne.s32.totalorder %s2721_s22, %s2717_s21  ;;  %s3595_s29 = smov (%p43_p0, %s41_s29), 0 }
  0x11   : > { %3578 = sst [smem:[#allocation19_spill]] %s3595_s29  ;;  %p2829_p4 = por %p111_p2, %p110_p1 }
  0x12   : > { %p117_p5 = scmp.eq.s32.totalorder %s2815_s27, 0  ;;  %s100_s8 = ssub.s32 %s2733_s25, %s3595_s29 }
  0x13   : > { %p202_p6 = scmp.eq.s32.totalorder %s2815_s27, 1  ;;  %p101_p7 = scmp.eq.s32.totalorder %s100_s8, 0 }
  0x14   : > { %p2839_p8 = por %p117_p5, %p116_p3  ;;  %p208_p10 = scmp.eq.s32.totalorder %s1991_s28, 1 }
  0x15   : > { %p2843_p9 = por %p202_p6, %p110_p1  ;;  %p1993_p12 = scmp.ge.s32.totalorder %s2737_s26, 2 }
  0x16   : > { %s2848_s11 = scalar_select %p101_p7, %s2725_s23, %s103_s30  }
  0x17   : > { %p2850_p11 = por %p208_p10, %p116_p3  ;;  %p2384_p13 = scmp.lt.s32.totalorder %s2737_s26, 2 }
  0x18   : > { %3582 = sst [smem:[#allocation20_spill]] %s2848_s11  ;;  %s283_s13 = sand.u32 1, %s2737_s26  }
  0x19   : > { %s285_s14 = sand.u32 1, %s2725_s23   ;;  %s2286_s16 = sshll.u32 %s2733_s25, 7 }
  0x1a   : > { %s1995_s15 = sshll.u32 %s285_s14, 7  ;;  %s3584_s2 = sld [smem:[#allocation21_spill]] }
  0x1b   : > { %s287_s20 = scalar_lea.vmem [#allocation8], %s1995_s15  ;;  %p2866_p0 = pnand %p2384_p13, %p2829_p4 }
  0x1c   : > { %s295_s28 = sshll.u32 %s287_s20, 4  ;;  %s1998_s29 = sshll.u32 %s285_s14, 8  ;;  %s296_s28 = int_to_ptr.vmem [resolvable:$true] %s295_s28 }
  0x1d   : > { %s284_s11 = scalar_lea.sflag [#allocation9], %s283_s13  ;;  %s2739_s23 = smov 256  }
  0x1e   : > { %s2740_s17 = smov 16   ;;  %p2001_p1 = scmp.ge.s32.totalorder %s2737_s26, 1 }
  0x1f   : > { %s309_s15 = scalar_lea.vmem [#allocation10], %s1998_s29  ;;  %p332_p3 = scmp.lt.s32.totalorder %s2737_s26, 3 }
  0x20   : > { %s292_s19 = scalar_lea.hbm %s3584_s2, %s2286_s16  ;;  %s317_s16 = sshll.u32 %s309_s15, 4  ;;  %s318_s16 = int_to_ptr.vmem [resolvable:$true] %s317_s16 }
  0x21   : > { %s293_s30 = sshll.u32 %s292_s19, 4  ;;  %s271_s19 = sshll.u32 %s3568_s1, 4  ;;  %s294_s30 = int_to_ptr.hbm [resolvable:$true] %s293_s30  ;;  %s272_s19 = int_to_ptr.hbm [resolvable:$true] %s271_s19 }
  0x22   : > { %2373 = dma.hbm_to_vmem [thread:$0]  (!%p2866_p0), %s294_s30, 2048, %s296_s28, %s284_s11, %s2739_s23, %s2739_s23, %s2740_s17  }
  0x23   : > { %p2877_p4 = pnand %p2001_p1, %p332_p3  ;;  %s2741_s13 = smov [#allocation5]  }
  0x24   : > { %s273_s14 = sshll.u32 %s2741_s13, 4  ;;  %p2368_p6 = pnand %p2384_p13, %p111_p2  ;;  %s274_s14 = int_to_ptr.vmem [resolvable:$true] %s273_s14 }
  0x25   : > { %s2742_s28 = smov 64   ;;  %s2743_s29 = smov 4  }
  0x26   : > { %2370 = dma.hbm_to_vmem [thread:$0]  (!%p2368_p6), %s272_s19, 512, %s274_s14, [#allocation6], %s2742_s28, %s2742_s28, %s2743_s29  }
  0x27   : > { %s2287_s30 = sshll.u32 %s2733_s25, 8  ;;  %336 = sbr.rel (%p2877_p4) target bundleno = 1420 (0x58c), region = 40 }
  0x28   : > { %s314_s7 = scalar_lea.hbm %s3570_s3, %s2287_s30 }
  0x29   : > { %s315_s18 = sshll.u32 %s314_s7, 4  ;;  %s316_s18 = int_to_ptr.hbm [resolvable:$true] %s315_s18 }
  0x2a   : > { %2376 = dma.hbm_to_vmem [thread:$0]  (!%p2866_p0), %s316_s18, 4096, %s318_s16, %s284_s11, %s2739_s23, %s2739_s23, %s2740_s17  }
  0x2c   : > { %2700 = dma.done.wait (%p117_p5), [#allocation6], 512  }
  0x2d   : > { %2702 = vsyncadd (%p117_p5), [#allocation6], 4294966784  ;;  %s348_s19 = sand.u32 1, %s2815_s27   ;;  %s2899_s2 = sand.u32 1, %s2721_s22  }
  0x2e   : > { %s2003_s13 = sshll.u32 %s2899_s2, 7  ;;  %s349_s14 = scalar_lea.sflag [#allocation9], %s348_s19 }
  0x2f   : > { %s2902_s8 = scalar_lea.vmem [#allocation8], %s2003_s13 }
  0x30   : > { %2704 = dma.done.wait (%p2839_p8), %s349_s14, 6144  }
  0x31   : > { %2706 = vsyncadd (%p2839_p8), %s349_s14, 4294961152  ;;  %s2004_s23 = sshll.u32 %s2899_s2, 8  ;;  %v2074_v0 = vld [vmem:[%s2902_s8 + $0x60] sm:$0xf]  ;;  %v2306_v1 = vld [vmem:[%s2902_s8 + $0x6c] sm:$0xf0] }
  0x32   : > { %v2304_v2 = vld [vmem:[%s2902_s8 + $0x64] sm:$0xf]  ;;  %v2075_v3 = vor.u32 %v2306_v1, %v2074_v0  ;;  %v2076_v4 = vld [vmem:[%s2902_s8 + $0x70] sm:$0xf0]  ;;  %v2082_v5 = vld [vmem:[%s2902_s8 + $0x68] sm:$0xf] }
  0x33   : > { %v2307_v6 = vld [vmem:[%s2902_s8 + $0x74] sm:$0xf0]  ;;  %v2079_v7 = vor.u32 %v2304_v2, %v2076_v4  ;;  %v2305_v9 = vld [vmem:[%s2902_s8 + $0x6c] sm:$0xf]  ;;  %v2084_v10 = vld [vmem:[%s2902_s8 + $0x78] sm:$0xf0] }
  0x34   : > { %v2083_v8 = vor.u32 %v2307_v6, %v2082_v5  ;;  %v2058_v11 = vld [vmem:[%s2902_s8 + $0x40] sm:$0xf]  ;;  %587 = vmatpush.bf16.msra.mxu0 %v2075_v3  ;;  %v2087_v12 = vor.u32 %v2305_v9, %v2084_v10  ;;  %v2302_v13 = vld [vmem:[%s2902_s8 + $0x4c] sm:$0xf0]  ;;  %v2300_v14 = vld [vmem:[%s2902_s8 + $0x44] sm:$0xf] }
  0x35   : > { %v2060_v15 = vld [vmem:[%s2902_s8 + $0x50] sm:$0xf0]  ;;  %616 = vmatpush.bf16.msra.mxu1 %v2079_v7  ;;  %v2059_v16 = vor.u32 %v2302_v13, %v2058_v11  ;;  %v2066_v18 = vld [vmem:[%s2902_s8 + $0x48] sm:$0xf]  ;;  %v2303_v19 = vld [vmem:[%s2902_s8 + $0x54] sm:$0xf0] }
  0x36   : > { %645 = vmatpush.bf16.msra.mxu2 %v2083_v8  ;;  %v2063_v17 = vor.u32 %v2300_v14, %v2060_v15  ;;  %v2301_v20 = vld [vmem:[%s2902_s8 + $0x4c] sm:$0xf]  ;;  %674 = vmatpush.bf16.msra.mxu3 %v2087_v12  ;;  %v2067_v21 = vor.u32 %v2303_v19, %v2066_v18  ;;  %v2068_v22 = vld [vmem:[%s2902_s8 + $0x58] sm:$0xf0]  ;;  %v2042_v23 = vld [vmem:[%s2902_s8 + $0x20] sm:$0xf] }
  0x37   : > { %v2298_v24 = vld [vmem:[%s2902_s8 + $0x2c] sm:$0xf0]  ;;  %v2071_v25 = vor.u32 %v2301_v20, %v2068_v22  ;;  %v2296_v26 = vld [vmem:[%s2902_s8 + $0x24] sm:$0xf]  ;;  %v2044_v27 = vld [vmem:[%s2902_s8 + $0x30] sm:$0xf0] }
  0x38   : > { %v2050_v28 = vld [vmem:[%s2902_s8 + $0x28] sm:$0xf]  ;;  %588 = vmatpush.bf16.msra.mxu0 %v2059_v16  ;;  %v2043_v29 = vor.u32 %v2298_v24, %v2042_v23  ;;  %v2299_v30 = vld [vmem:[%s2902_s8 + $0x34] sm:$0xf0]  ;;  %v2297_v31 = vld [vmem:[%s2902_s8 + $0x2c] sm:$0xf]  ;;  %v2047_v33 = vor.u32 %v2296_v26, %v2044_v27 }
  0x39   : > { %v2052_v32 = vld [vmem:[%s2902_s8 + $0x38] sm:$0xf0]  ;;  %617 = vmatpush.bf16.msra.mxu1 %v2063_v17  ;;  %v2051_v34 = vor.u32 %v2299_v30, %v2050_v28  ;;  %v2026_v35 = vld [vmem:[%s2902_s8] sm:$0xf]  ;;  %v2294_v36 = vld [vmem:[%s2902_s8 + $0xc] sm:$0xf0] }
  0x3a   : > { %646 = vmatpush.bf16.msra.mxu2 %v2067_v21  ;;  %v2292_v37 = vld [vmem:[%s2902_s8 + $0x4] sm:$0xf]  ;;  %675 = vmatpush.bf16.msra.mxu3 %v2071_v25  ;;  %v2055_v38 = vor.u32 %v2297_v31, %v2052_v32  ;;  %v2028_v39 = vld [vmem:[%s2902_s8 + $0x10] sm:$0xf0]  ;;  %v2034_v40 = vld [vmem:[%s2902_s8 + $0x8] sm:$0xf]  ;;  %v2027_v44 = vor.u32 %v2294_v36, %v2026_v35 }
  0x3b   : > { %v2295_v41 = vld [vmem:[%s2902_s8 + $0x14] sm:$0xf0]  ;;  %v2293_v42 = vld [vmem:[%s2902_s8 + $0xc] sm:$0xf]  ;;  %v2036_v43 = vld [vmem:[%s2902_s8 + $0x18] sm:$0xf0]  ;;  %v2031_v48 = vor.u32 %v2292_v37, %v2028_v39 }
  0x3c   : > { %589 = vmatpush.bf16.msra.mxu0 %v2043_v29  ;;  %s2943_s27 = scalar_lea.vmem [#allocation10], %s2004_s23  ;;  %v2035_v49 = vor.u32 %v2295_v41, %v2034_v40  ;;  %v2288_v50 = vld [vmem:[#allocation5] sm:$0xff]  ;;  %v2039_v52 = vor.u32 %v2293_v42, %v2036_v43  ;;  %vm570_vm0 = vcmask 523264   ;;  %v2289_v40 = vld [vmem:[#allocation5 + $0x8] sm:$0xff]  ;;  %s1025_s9 = smul.u32 5, %s2729_s24 }
  0x3d   : > { %v2220_v45 = vld [vmem:[%s2943_s27 + $0xe0] sm:$0xf]  ;;  %v2338_v46 = vld [vmem:[%s2943_s27 + $0xec] sm:$0xf0]  ;;  %v2336_v47 = vld [vmem:[%s2943_s27 + $0xe4] sm:$0xf]  ;;  %618 = vmatpush.bf16.msra.mxu1 %v2047_v33 }
  0x3e   : > { %647 = vmatpush.bf16.msra.mxu2 %v2051_v34  ;;  %v2222_v51 = vld [vmem:[%s2943_s27 + $0xf0] sm:$0xf0]  ;;  %676 = vmatpush.bf16.msra.mxu3 %v2055_v38  ;;  %v2949_v53 = vor.u32 %v2338_v46, %v2220_v45  ;;  %v2228_v54 = vld [vmem:[%s2943_s27 + $0xe8] sm:$0xf]  ;;  %v2339_v55 = vld [vmem:[%s2943_s27 + $0xf4] sm:$0xf0] }
  0x3f   : > { %v2337_v56 = vld [vmem:[%s2943_s27 + $0xec] sm:$0xf]  ;;  %v2954_v57 = vor.u32 %v2336_v47, %v2222_v51  ;;  %v2230_v58 = vld [vmem:[%s2943_s27 + $0xf8] sm:$0xf0]  ;;  %v2204_v59 = vld [vmem:[%s2943_s27 + $0xc0] sm:$0xf]  ;;  %v2961_v63 = vor.u32 %v2339_v55, %v2228_v54 }
  0x40   : > { %v2334_v60 = vld [vmem:[%s2943_s27 + $0xcc] sm:$0xf0]  ;;  %590 = vmatpush.bf16.msra.mxu0 %v2027_v44  ;;  %v2332_v61 = vld [vmem:[%s2943_s27 + $0xc4] sm:$0xf]  ;;  %v2206_v62 = vld [vmem:[%s2943_s27 + $0xd0] sm:$0xf0]  ;;  %v2964_v0 = vor.u32 %v2337_v56, %v2230_v58 }
  0x41   : > { %619 = vmatpush.bf16.msra.mxu1 %v2031_v48  ;;  %v2966_v1 = vor.u32 %v2334_v60, %v2204_v59  ;;  %v2212_v2 = vld [vmem:[%s2943_s27 + $0xc8] sm:$0xf]  ;;  %v2335_v3 = vld [vmem:[%s2943_s27 + $0xd4] sm:$0xf0]  ;;  %v2333_v4 = vld [vmem:[%s2943_s27 + $0xcc] sm:$0xf]  ;;  %v2973_v5 = vor.u32 %v2332_v61, %v2206_v62 }
  0x42   : > { %648 = vmatpush.bf16.msra.mxu2 %v2035_v49  ;;  %677 = vmatpush.bf16.msra.mxu3 %v2039_v52  ;;  %v2214_v6 = vld [vmem:[%s2943_s27 + $0xd8] sm:$0xf0]  ;;  %v2188_v7 = vld [vmem:[%s2943_s27 + $0xa0] sm:$0xf]  ;;  %v2330_v8 = vld [vmem:[%s2943_s27 + $0xac] sm:$0xf0]  ;;  %v2984_v11 = vor.u32 %v2335_v3, %v2212_v2 }
  0x43   : > { %2088 = vmatmul.msk.bf16.vlgmr.msra.gmra.mxu0 %vm570_vm0, %v2288_v50  ;;  %v2328_v9 = vld [vmem:[%s2943_s27 + $0xa4] sm:$0xf]  ;;  %v2190_v10 = vld [vmem:[%s2943_s27 + $0xb0] sm:$0xf0]  ;;  %v2988_v12 = vor.u32 %v2333_v4, %v2214_v6  ;;  %v2990_v13 = vor.u32 %v2330_v8, %v2188_v7  ;;  %v2196_v14 = vld [vmem:[%s2943_s27 + $0xa8] sm:$0xf] }
  0x44   : > { %935 = vmatpush.bf16.msrb.mxu0 %v2949_v53  ;;  %2092 = vmatmul.msk.bf16.vlgmr.msra.gmra.mxu1 %vm570_vm0, %v2288_v50  ;;  %v2331_v15 = vld [vmem:[%s2943_s27 + $0xb4] sm:$0xf0]  ;;  %v2329_v16 = vld [vmem:[%s2943_s27 + $0xac] sm:$0xf]  ;;  %v2996_v17 = vor.u32 %v2328_v9, %v2190_v10  ;;  %v2198_v18 = vld [vmem:[%s2943_s27 + $0xb8] sm:$0xf0] }
  0x45   : > { %948 = vmatpush.bf16.msrb.mxu1 %v2954_v57  ;;  %2096 = vmatmul.msk.bf16.vlgmr.msra.gmra.mxu2 %vm570_vm0, %v2288_v50  ;;  %v2172_v19 = vld [vmem:[%s2943_s27 + $0x80] sm:$0xf]  ;;  %v2326_v20 = vld [vmem:[%s2943_s27 + $0x8c] sm:$0xf0]  ;;  %v2324_v21 = vld [vmem:[%s2943_s27 + $0x84] sm:$0xf]  ;;  %v3004_v23 = vor.u32 %v2331_v15, %v2196_v14  ;;  %v3008_v24 = vor.u32 %v2329_v16, %v2198_v18 }
  0x46   : > { %2100 = vmatmul.msk.bf16.vlgmr.msra.gmra.mxu3 %vm570_vm0, %v2288_v50  ;;  %961 = vmatpush.bf16.msrb.mxu2 %v2961_v63  ;;  %v2174_v22 = vld [vmem:[%s2943_s27 + $0x90] sm:$0xf0]  ;;  %v3010_v25 = vor.u32 %v2326_v20, %v2172_v19  ;;  %v2180_v26 = vld [vmem:[%s2943_s27 + $0x88] sm:$0xf]  ;;  %v2327_v27 = vld [vmem:[%s2943_s27 + $0x94] sm:$0xf0] }
  0x47   : > { %974 = vmatpush.bf16.msrb.mxu3 %v2964_v0  ;;  %v2325_v28 = vld [vmem:[%s2943_s27 + $0x8c] sm:$0xf]  ;;  %v3016_v29 = vor.u32 %v2324_v21, %v2174_v22  ;;  %v2182_v30 = vld [vmem:[%s2943_s27 + $0x98] sm:$0xf0]  ;;  %v2156_v31 = vld [vmem:[%s2943_s27 + $0x60] sm:$0xf]  ;;  %v3024_v35 = vor.u32 %v2327_v27, %v2180_v26 }
  0x48   : > { %936 = vmatpush.bf16.msrb.mxu0 %v2966_v1  ;;  %v2322_v32 = vld [vmem:[%s2943_s27 + $0x6c] sm:$0xf0]  ;;  %v2320_v33 = vld [vmem:[%s2943_s27 + $0x64] sm:$0xf]  ;;  %v2158_v34 = vld [vmem:[%s2943_s27 + $0x70] sm:$0xf0]  ;;  %v3028_v36 = vor.u32 %v2325_v28, %v2182_v30 }
  0x49   : > { %949 = vmatpush.bf16.msrb.mxu1 %v2973_v5  ;;  %v3030_v37 = vor.u32 %v2322_v32, %v2156_v31  ;;  %v2164_v38 = vld [vmem:[%s2943_s27 + $0x68] sm:$0xf]  ;;  %v2323_v39 = vld [vmem:[%s2943_s27 + $0x74] sm:$0xf0]  ;;  %v3035_v41 = vor.u32 %v2320_v33, %v2158_v34  ;;  %v2321_v42 = vld [vmem:[%s2943_s27 + $0x6c] sm:$0xf] }
  0x4a   : > { %962 = vmatpush.bf16.msrb.mxu2 %v2984_v11  ;;  %v2166_v43 = vld [vmem:[%s2943_s27 + $0x78] sm:$0xf0]  ;;  %v3040_v44 = vor.u32 %v2323_v39, %v2164_v38  ;;  %v2140_v46 = vld [vmem:[%s2943_s27 + $0x40] sm:$0xf]  ;;  %v2318_v47 = vld [vmem:[%s2943_s27 + $0x4c] sm:$0xf0] }
  0x4b   : > { %975 = vmatpush.bf16.msrb.mxu3 %v2988_v12  ;;  %v3044_v45 = vor.u32 %v2321_v42, %v2166_v43  ;;  %v2316_v48 = vld [vmem:[%s2943_s27 + $0x44] sm:$0xf]  ;;  %v3056_v49 = vor.u32 %v2318_v47, %v2140_v46  ;;  %v2142_v50 = vld [vmem:[%s2943_s27 + $0x50] sm:$0xf0]  ;;  %v2148_v51 = vld [vmem:[%s2943_s27 + $0x48] sm:$0xf] }
  0x4c   : > { %937 = vmatpush.bf16.msrb.mxu0 %v2990_v13  ;;  %v2319_v52 = vld [vmem:[%s2943_s27 + $0x54] sm:$0xf0]  ;;  %v3061_v54 = vor.u32 %v2316_v48, %v2142_v50  ;;  %v2317_v56 = vld [vmem:[%s2943_s27 + $0x4c] sm:$0xf]  ;;  %v2150_v58 = vld [vmem:[%s2943_s27 + $0x58] sm:$0xf0] }
  0x4d   : > { %950 = vmatpush.bf16.msrb.mxu1 %v2996_v17  ;;  %v3063_v55 = vor.u32 %v2319_v52, %v2148_v51  ;;  %v2124_v59 = vld [vmem:[%s2943_s27 + $0x20] sm:$0xf]  ;;  %v3069_v60 = vor.u32 %v2317_v56, %v2150_v58  ;;  %v2314_v61 = vld [vmem:[%s2943_s27 + $0x2c] sm:$0xf0]  ;;  %v2312_v62 = vld [vmem:[%s2943_s27 + $0x24] sm:$0xf] }
  0x4e   : > { %963 = vmatpush.bf16.msrb.mxu2 %v3004_v23  ;;  %v2126_v2 = vld [vmem:[%s2943_s27 + $0x30] sm:$0xf0]  ;;  %v3076_v3 = vor.u32 %v2314_v61, %v2124_v59  ;;  %v2132_v6 = vld [vmem:[%s2943_s27 + $0x28] sm:$0xf]  ;;  %v2315_v7 = vld [vmem:[%s2943_s27 + $0x34] sm:$0xf0] }
  0x4f   : > { %976 = vmatpush.bf16.msrb.mxu3 %v3008_v24  ;;  %v3078_v4 = vor.u32 %v2312_v62, %v2126_v2  ;;  %v2313_v8 = vld [vmem:[%s2943_s27 + $0x2c] sm:$0xf]  ;;  %v3084_v9 = vor.u32 %v2315_v7, %v2132_v6  ;;  %v2134_v10 = vld [vmem:[%s2943_s27 + $0x38] sm:$0xf0]  ;;  %v2108_v14 = vld [vmem:[%s2943_s27] sm:$0xf] }
  0x50   : > { %938 = vmatpush.bf16.msrb.mxu0 %v3010_v25  ;;  %v2310_v15 = vld [vmem:[%s2943_s27 + $0xc] sm:$0xf0]  ;;  %v3089_v16 = vor.u32 %v2313_v8, %v2134_v10  ;;  %v2308_v18 = vld [vmem:[%s2943_s27 + $0x4] sm:$0xf]  ;;  %v2110_v19 = vld [vmem:[%s2943_s27 + $0x10] sm:$0xf0] }
  0x51   : > { %951 = vmatpush.bf16.msrb.mxu1 %v3016_v29  ;;  %v2116_v20 = vld [vmem:[%s2943_s27 + $0x8] sm:$0xf]  ;;  %v3095_v21 = vor.u32 %v2310_v15, %v2108_v14  ;;  %v2311_v22 = vld [vmem:[%s2943_s27 + $0x14] sm:$0xf0]  ;;  %v2309_v26 = vld [vmem:[%s2943_s27 + $0xc] sm:$0xf]  ;;  %v3102_v28 = vor.u32 %v2308_v18, %v2110_v19 }
  0x52   : > { %964 = vmatpush.bf16.msrb.mxu2 %v3024_v35  ;;  %v2118_v27 = vld [vmem:[%s2943_s27 + $0x18] sm:$0xf0]  ;;  %v3104_v30 = vor.u32 %v2311_v22, %v2116_v20  ;;  %v2290_v32 = vld [vmem:[#allocation5 + $0x10] sm:$0xff]  ;;  %s766_s11 = smul.u32 7, %s2729_s24  ;;  %s1026_s17 = sadd.s32 1, %s1025_s9  ;;  %v3124_v33 = vld [vmem:[%s3567_s0] sm:$0xff] }
  0x53   : > { %977 = vmatpush.bf16.msrb.mxu3 %v3028_v36  ;;  %2089 = vmatmul.msk.bf16.gmra.mxu0 %vm570_vm0, %v2289_v40  ;;  %v3107_v31 = vor.u32 %v2309_v26, %v2118_v27  ;;  %v2744_v38 = vmov 0   ;;  %s1518_s28 = smul.u32 4294967291, %s2729_s24  ;;  %v2291_v43 = vld [vmem:[#allocation5 + $0x18] sm:$0xff]  ;;  %v2745_v48 = vmov 0.0|0.0   ;;  %p416_p2 = scmp.lt.s32.totalorder %s2729_s24, 1 }
  0x54   : > { %939 = vmatpush.bf16.msrb.mxu0 %v3030_v37  ;;  %2093 = vmatmul.msk.bf16.gmra.mxu1 %vm570_vm0, %v2289_v40  ;;  %v1011_v34 = vstv %s766_s11  ;;  %s2340_s13 = smul.u32 224, %s2729_s24  ;;  %s2005_s8 = sshll.u32 %s2899_s2, 5 }
  0x55   : > { %952 = vmatpush.bf16.msrb.mxu1 %v3035_v41  ;;  %2097 = vmatmul.msk.bf16.gmra.mxu2 %vm570_vm0, %v2289_v40  ;;  %vm1012_vm1 = vcmp.gt.s32.totalorder %v3124_v33, %v1011_v34  ;;  %s1519_s29 = sadd.s32 6, %s1518_s28  ;;  %s2341_s23 = smul.u32 28, %s2729_s24 }
  0x56   : > { %2101 = vmatmul.msk.bf16.gmra.mxu3 %vm570_vm0, %v2289_v40  ;;  %965 = vmatpush.bf16.msrb.mxu2 %v3040_v44  ;;  %v1013_v39 = vsel %vm1012_vm1, 1, %v2744_v38  ;;  %v1110_v40 = vstv %s1026_s17  ;;  %v1603_v46 = vstv %s1519_s29  ;;  %s417_s30 = scalar_select %p416_p2, %s2729_s24, 1 }
  0x57   : > { %978 = vmatpush.bf16.msrb.mxu3 %v3044_v45  ;;  %2446 = vset.pattern.permute.xlu0 %v2744_v38  ;;  %vm1111_vm2 = vcmp.gt.s32.totalorder %v3124_v33, %v1110_v40  ;;  %vm1604_vm3 = vcmp.gt.s32.totalorder %v3124_v33, %v1603_v46  ;;  %s769_s14 = scalar_lea.vmem [#allocation4], %s2340_s13  ;;  %s3252_s27 = scalar_lea.vmem [#allocation11], %s2005_s8 }
  0x58   : > { %940 = vmatpush.bf16.msrb.mxu0 %v3056_v49  ;;  %1015 = vperm.xlu0 %2446, %v1013_v39   ;;  %v1112_v42 = vsel %vm1111_vm2, 1, %v2744_v38  ;;  %v1605_v47 = vsel %vm1604_vm3, 1, %v2744_v38  ;;  %s2007_s15 = sshll.u32 %s417_s30, 2  ;;  %s1021_s9 = scalar_lea.vmem %s3252_s27, %s2341_s23 [#allocation11] }
  0x59   : > { %953 = vmatpush.bf16.msrb.mxu1 %v3061_v54  ;;  %2447 = vset.pattern.permute.xlu1 %v2744_v38  ;;  %s419_s19 = scalar_lea.vmem %s3571_s4, %s2007_s15  ;;  %s2235_s11 = smul.u32 160, %s2729_s24 }
  0x5a   : > { %966 = vmatpush.bf16.msrb.mxu2 %v3063_v55  ;;  %2448 = vset.pattern.permute.xlu2 %v2744_v38  ;;  %v460_v50 = vld [vmem:[%s419_s19] sm:$0xf]  ;;  %s1124_s17 = smul.u32 3, %s2729_s24  ;;  %s1223_s28 = sadd.s32 3, %s2729_s24 }
  0x5b   : > { %979 = vmatpush.bf16.msrb.mxu3 %v3069_v60  ;;  %v3207_v51 = vperm.slane %v460_v50, 0  ;;  %v3209_v52 = vperm.slane %v460_v50, 1  ;;  %v3213_v62 = vperm.slane %v460_v50, 2  ;;  %v3215_v2 = vperm.slane %v460_v50, 3  ;;  %s1858_s20 = scalar_lea.vmem [#allocation4], %s2235_s11  ;;  %s1617_s29 = smul.u32 4294967289, %s2729_s24 }
  0x5c   : > { %941 = vmatpush.bf16.msrb.mxu0 %v3076_v3  ;;  %s1125_s16 = sadd.s32 2, %s1124_s17  ;;  %s2240_s15 = smul.u32 20, %s2729_s24 }
  0x5d   : > { %954 = vmatpush.bf16.msrb.mxu1 %v3078_v4  ;;  %s1618_s30 = sadd.s32 7, %s1617_s29  ;;  %s2242_s18 = smul.u32 96, %s2729_s24 }
  0x5e   : > { %967 = vmatpush.bf16.msrb.mxu2 %v3084_v9  ;;  %s1862_s7 = scalar_lea.vmem %s3252_s27, %s2240_s15 [#allocation11]  ;;  %s2247_s13 = smul.u32 12, %s2729_s24 }
  0x5f   : > { %980 = vmatpush.bf16.msrb.mxu3 %v3089_v16  ;;  %s1866_s19 = scalar_lea.vmem [#allocation4], %s2242_s18  ;;  %s2249_s8 = sshll.u32 %s2729_s24, 5 }
  0x60   : > { %942 = vmatpush.bf16.msrb.mxu0 %v3095_v21  ;;  %1114 = vperm.xlu0 %2446, %v1112_v42   ;;  %s1419_s23 = smul.u32 4294967293, %s2729_s24  ;;  %s3391_s11 = ssub.s32 4, %s2729_s24 }
  0x61   : > { %955 = vmatpush.bf16.msrb.mxu1 %v3102_v28 }
  0x62   : > { %968 = vmatpush.bf16.msrb.mxu2 %v3104_v30  ;;  %s1420_s17 = sadd.s32 5, %s1419_s23  ;;  %s2271_s23 = smul.u32 4294967276, %s2729_s24 }
  0x63   : > { %981 = vmatpush.bf16.msrb.mxu3 %v3107_v31  ;;  %2090 = vmatmul.msk.bf16.gmra.mxu0 %vm570_vm0, %v2290_v32 }
  0x64   : > { %1035 = vmatpush.bf16.msra.mxu0 %v2949_v53  ;;  %2094 = vmatmul.msk.bf16.gmra.mxu1 %vm570_vm0, %v2290_v32 }
  0x65   : > { %1048 = vmatpush.bf16.msra.mxu1 %v2954_v57  ;;  %2098 = vmatmul.msk.bf16.gmra.mxu2 %vm570_vm0, %v2290_v32 }
  0x66   : > { %2102 = vmatmul.msk.bf16.gmra.mxu3 %vm570_vm0, %v2290_v32  ;;  %1061 = vmatpush.bf16.msra.mxu2 %v2961_v63 }
  0x67   : > { %1074 = vmatpush.bf16.msra.mxu3 %v2964_v0 }
  0x68   : > { %1036 = vmatpush.bf16.msra.mxu0 %v2966_v1  ;;  %1607 = vperm.xlu0 %2446, %v1605_v47  }
  0x69   : > { %1049 = vmatpush.bf16.msra.mxu1 %v2973_v5 }
  0x6a   : > { %1062 = vmatpush.bf16.msra.mxu2 %v2984_v11 }
  0x6b   : > { %1075 = vmatpush.bf16.msra.mxu3 %v2988_v12 }
  0x6c   : > { %1037 = vmatpush.bf16.msra.mxu0 %v2990_v13 }
  0x6d   : > { %1050 = vmatpush.bf16.msra.mxu1 %v2996_v17 }
  0x6e   : > { %1063 = vmatpush.bf16.msra.mxu2 %v3004_v23 }
  0x6f   : > { %1076 = vmatpush.bf16.msra.mxu3 %v3008_v24 }
  0x70   : > { %1038 = vmatpush.bf16.msra.mxu0 %v3010_v25 }
  0x71   : > { %1051 = vmatpush.bf16.msra.mxu1 %v3016_v29 }
  0x72   : > { %1064 = vmatpush.bf16.msra.mxu2 %v3024_v35 }
  0x73   : > { %1077 = vmatpush.bf16.msra.mxu3 %v3028_v36  ;;  %2091 = vmatmul.msk.bf16.gmra.mxu0 %vm570_vm0, %v2291_v43 }
  0x74   : > { %2095 = vmatmul.msk.bf16.gmra.mxu1 %vm570_vm0, %v2291_v43  ;;  %1039 = vmatpush.bf16.msra.mxu0 %v3030_v37 }
  0x75   : > { %1052 = vmatpush.bf16.msra.mxu1 %v3035_v41  ;;  %2099 = vmatmul.msk.bf16.gmra.mxu2 %vm570_vm0, %v2291_v43 }
  0x76   : > { %2103 = vmatmul.msk.bf16.gmra.mxu3 %vm570_vm0, %v2291_v43  ;;  %1065 = vmatpush.bf16.msra.mxu2 %v3040_v44 }
  0x77   : > { %1078 = vmatpush.bf16.msra.mxu3 %v3044_v45 }
  0x78   : > { %1040 = vmatpush.bf16.msra.mxu0 %v3056_v49 }
  0x79   : > { %1053 = vmatpush.bf16.msra.mxu1 %v3061_v54 }
  0x7a   : > { %1066 = vmatpush.bf16.msra.mxu2 %v3063_v55 }
  0x7b   : > { %1079 = vmatpush.bf16.msra.mxu3 %v3069_v60 }
  0x7c   : > { %1041 = vmatpush.bf16.msra.mxu0 %v3076_v3 }
  0x7d   : > { %1054 = vmatpush.bf16.msra.mxu1 %v3078_v4 }
  0x7e   : > { %1067 = vmatpush.bf16.msra.mxu2 %v3084_v9 }
  0x7f   : > { %1080 = vmatpush.bf16.msra.mxu3 %v3089_v16 }
  0x80   : > { %1042 = vmatpush.bf16.msra.mxu0 %v3095_v21 }
  0x81   : > { %1055 = vmatpush.bf16.msra.mxu1 %v3102_v28 }
  0x82   : > { %1068 = vmatpush.bf16.msra.mxu2 %v3104_v30 }
  0x83   : > { %1081 = vmatpush.bf16.msra.mxu3 %v3107_v31  ;;  %943 = vmatmul.bf16.vlgmr.msrb.gmra.mxu0 %v2745_v48 }
  0x84   : > { %956 = vmatmul.bf16.vlgmr.msrb.gmra.mxu1 %v2745_v48  ;;  %1134 = vmatpush.bf16.msrb.mxu0 %v2949_v53 }
  0x85   : > { %969 = vmatmul.bf16.vlgmr.msrb.gmra.mxu2 %v2745_v48  ;;  %1147 = vmatpush.bf16.msrb.mxu1 %v2954_v57 }
  0x86   : > { %982 = vmatmul.bf16.vlgmr.msrb.gmra.mxu3 %v2745_v48  ;;  %1160 = vmatpush.bf16.msrb.mxu2 %v2961_v63 }
  0x87   : > { %1173 = vmatpush.bf16.msrb.mxu3 %v2964_v0 }
  0x88   : > { %1135 = vmatpush.bf16.msrb.mxu0 %v2966_v1 }
  0x89   : > { %1148 = vmatpush.bf16.msrb.mxu1 %v2973_v5 }
  0x8a   : > { %1161 = vmatpush.bf16.msrb.mxu2 %v2984_v11 }
  0x8b   : > { %1174 = vmatpush.bf16.msrb.mxu3 %v2988_v12 }
  0x8c   : > { %1136 = vmatpush.bf16.msrb.mxu0 %v2990_v13 }
  0x8d   : > { %1149 = vmatpush.bf16.msrb.mxu1 %v2996_v17 }
  0x8e   : > { %1162 = vmatpush.bf16.msrb.mxu2 %v3004_v23 }
  0x8f   : > { %1175 = vmatpush.bf16.msrb.mxu3 %v3008_v24 }
  0x90   : > { %1137 = vmatpush.bf16.msrb.mxu0 %v3010_v25 }
  0x91   : > { %1150 = vmatpush.bf16.msrb.mxu1 %v3016_v29 }
  0x92   : > { %1163 = vmatpush.bf16.msrb.mxu2 %v3024_v35 }
  0x93   : > { %1176 = vmatpush.bf16.msrb.mxu3 %v3028_v36 }
  0x94   : > { %1138 = vmatpush.bf16.msrb.mxu0 %v3030_v37 }
  0x95   : > { %1151 = vmatpush.bf16.msrb.mxu1 %v3035_v41 }
  0x96   : > { %1164 = vmatpush.bf16.msrb.mxu2 %v3040_v44 }
  0x97   : > { %1177 = vmatpush.bf16.msrb.mxu3 %v3044_v45 }
  0x98   : > { %1139 = vmatpush.bf16.msrb.mxu0 %v3056_v49 }
  0x99   : > { %1152 = vmatpush.bf16.msrb.mxu1 %v3061_v54 }
  0x9a   : > { %1165 = vmatpush.bf16.msrb.mxu2 %v3063_v55 }
  0x9b   : > { %1178 = vmatpush.bf16.msrb.mxu3 %v3069_v60 }
  0x9c   : > { %1140 = vmatpush.bf16.msrb.mxu0 %v3076_v3 }
  0x9d   : > { %1153 = vmatpush.bf16.msrb.mxu1 %v3078_v4 }
  0x9e   : > { %1166 = vmatpush.bf16.msrb.mxu2 %v3084_v9 }
  0x9f   : > { %1179 = vmatpush.bf16.msrb.mxu3 %v3089_v16 }
  0xa0   : > { %1141 = vmatpush.bf16.msrb.mxu0 %v3095_v21 }
  0xa1   : > { %1154 = vmatpush.bf16.msrb.mxu1 %v3102_v28 }
  0xa2   : > { %1167 = vmatpush.bf16.msrb.mxu2 %v3104_v30 }
  0xa3   : > { %1180 = vmatpush.bf16.msrb.mxu3 %v3107_v31 }
  0xc0   : > { %v592_v56 = vpop.f32.mrf.mxu0 }
  0xc1   : > { %v593_v58 = vadd.f32 %v592_v56, %v3207_v51  ;;  %v621_v59 = vpop.f32.mrf.mxu1 }
  0xc2   : > { %v622_v61 = vadd.f32 %v621_v59, %v3209_v52 }
  0xc3   : > { %699 = vst [vmem:[#allocation4] sm:$0xff] %v593_v58 }
  0xc4   : > { %700 = vst [vmem:[#allocation4 + $0x8] sm:$0xff] %v622_v61 }
  0xc8   : > { %v650_v6 = vpop.f32.mrf.mxu2  ;;  %v594_v10 = vpop.f32.mrf.mxu0 }
  0xc9   : > { %v651_v7 = vadd.f32 %v650_v6, %v3213_v62  ;;  %v679_v8 = vpop.f32.mrf.mxu3  ;;  %v595_v15 = vadd.f32 %v594_v10, %v3207_v51  ;;  %v623_v18 = vpop.f32.mrf.mxu1 }
  0xca   : > { %v680_v14 = vadd.f32 %v679_v8, %v3215_v2  ;;  %v624_v19 = vadd.f32 %v623_v18, %v3209_v52 }
  0xcb   : > { %701 = vst [vmem:[#allocation4 + $0x10] sm:$0xff] %v651_v7 }
  0xcc   : > { %702 = vst [vmem:[#allocation4 + $0x18] sm:$0xff] %v680_v14 }
  0xcd   : > { %703 = vst [vmem:[#allocation4 + $0x20] sm:$0xff] %v595_v15 }
  0xce   : > { %704 = vst [vmem:[#allocation4 + $0x28] sm:$0xff] %v624_v19 }
  0xd0   : > { %v652_v20 = vpop.f32.mrf.mxu2  ;;  %v597_v27 = vpop.f32.mrf.mxu0 }
  0xd1   : > { %v653_v22 = vadd.f32 %v652_v20, %v3213_v62  ;;  %v681_v26 = vpop.f32.mrf.mxu3  ;;  %v598_v34 = vadd.f32 %v597_v27, %v3207_v51  ;;  %v626_v39 = vpop.f32.mrf.mxu1 }
  0xd2   : > { %v682_v32 = vadd.f32 %v681_v26, %v3215_v2  ;;  %v627_v40 = vadd.f32 %v626_v39, %v3209_v52 }
  0xd3   : > { %705 = vst [vmem:[#allocation4 + $0x30] sm:$0xff] %v653_v22 }
  0xd4   : > { %706 = vst [vmem:[#allocation4 + $0x38] sm:$0xff] %v682_v32 }
  0xd5   : > { %707 = vst [vmem:[#allocation4 + $0x40] sm:$0xff] %v598_v34 }
  0xd6   : > { %708 = vst [vmem:[#allocation4 + $0x48] sm:$0xff] %v627_v40 }
  0xd8   : > { %v655_v42 = vpop.f32.mrf.mxu2  ;;  %v599_v47 = vpop.f32.mrf.mxu0 }
  0xd9   : > { %v656_v43 = vadd.f32 %v655_v42, %v3213_v62  ;;  %v684_v46 = vpop.f32.mrf.mxu3  ;;  %v600_v50 = vadd.f32 %v599_v47, %v3207_v51  ;;  %v628_v56 = vpop.f32.mrf.mxu1 }
  0xda   : > { %v685_v48 = vadd.f32 %v684_v46, %v3215_v2  ;;  %v629_v58 = vadd.f32 %v628_v56, %v3209_v52 }
  0xdb   : > { %709 = vst [vmem:[#allocation4 + $0x50] sm:$0xff] %v656_v43 }
  0xdc   : > { %710 = vst [vmem:[#allocation4 + $0x58] sm:$0xff] %v685_v48 }
  0xdd   : > { %711 = vst [vmem:[#allocation4 + $0x60] sm:$0xff] %v600_v50 }
  0xde   : > { %712 = vst [vmem:[#allocation4 + $0x68] sm:$0xff] %v629_v58 }
  0xe0   : > { %v657_v59 = vpop.f32.mrf.mxu2  ;;  %v602_v7 = vpop.f32.mrf.mxu0 }
  0xe1   : > { %v658_v61 = vadd.f32 %v657_v59, %v3213_v62  ;;  %v686_v6 = vpop.f32.mrf.mxu3  ;;  %v603_v10 = vadd.f32 %v602_v7, %v3207_v51  ;;  %v631_v14 = vpop.f32.mrf.mxu1 }
  0xe2   : > { %v687_v8 = vadd.f32 %v686_v6, %v3215_v2  ;;  %v632_v15 = vadd.f32 %v631_v14, %v3209_v52 }
  0xe3   : > { %713 = vst [vmem:[#allocation4 + $0x70] sm:$0xff] %v658_v61 }
  0xe4   : > { %714 = vst [vmem:[#allocation4 + $0x78] sm:$0xff] %v687_v8 }
  0xe5   : > { %715 = vst [vmem:[#allocation4 + $0x80] sm:$0xff] %v603_v10 }
  0xe6   : > { %716 = vst [vmem:[#allocation4 + $0x88] sm:$0xff] %v632_v15 }
  0xe8   : > { %v660_v18 = vpop.f32.mrf.mxu2  ;;  %v604_v22 = vpop.f32.mrf.mxu0 }
  0xe9   : > { %v661_v19 = vadd.f32 %v660_v18, %v3213_v62  ;;  %v689_v20 = vpop.f32.mrf.mxu3  ;;  %v605_v27 = vadd.f32 %v604_v22, %v3207_v51  ;;  %v633_v32 = vpop.f32.mrf.mxu1 }
  0xea   : > { %v690_v26 = vadd.f32 %v689_v20, %v3215_v2  ;;  %v634_v34 = vadd.f32 %v633_v32, %v3209_v52 }
  0xeb   : > { %717 = vst [vmem:[#allocation4 + $0x90] sm:$0xff] %v661_v19 }
  0xec   : > { %718 = vst [vmem:[#allocation4 + $0x98] sm:$0xff] %v690_v26 }
  0xed   : > { %719 = vst [vmem:[#allocation4 + $0xa0] sm:$0xff] %v605_v27 }
  0xee   : > { %720 = vst [vmem:[#allocation4 + $0xa8] sm:$0xff] %v634_v34 }
  0xf0   : > { %v662_v39 = vpop.f32.mrf.mxu2  ;;  %v607_v43 = vpop.f32.mrf.mxu0 }
  0xf1   : > { %v663_v40 = vadd.f32 %v662_v39, %v3213_v62  ;;  %v691_v42 = vpop.f32.mrf.mxu3  ;;  %v608_v47 = vadd.f32 %v607_v43, %v3207_v51  ;;  %v636_v48 = vpop.f32.mrf.mxu1 }
  0xf2   : > { %v692_v46 = vadd.f32 %v691_v42, %v3215_v2  ;;  %v637_v50 = vadd.f32 %v636_v48, %v3209_v52 }
  0xf3   : > { %721 = vst [vmem:[#allocation4 + $0xb0] sm:$0xff] %v663_v40 }
  0xf4   : > { %722 = vst [vmem:[#allocation4 + $0xb8] sm:$0xff] %v692_v46 }
  0xf5   : > { %723 = vst [vmem:[#allocation4 + $0xc0] sm:$0xff] %v608_v47 }
  0xf6   : > { %724 = vst [vmem:[#allocation4 + $0xc8] sm:$0xff] %v637_v50 }
  0xf8   : > { %v665_v56 = vpop.f32.mrf.mxu2  ;;  %v609_v61 = vpop.f32.mrf.mxu0 }
  0xf9   : > { %v666_v58 = vadd.f32 %v665_v56, %v3213_v62  ;;  %v694_v59 = vpop.f32.mrf.mxu3  ;;  %v610_v7 = vadd.f32 %v609_v61, %v3207_v51  ;;  %v638_v8 = vpop.f32.mrf.mxu1 }
  0xfa   : > { %v695_v6 = vadd.f32 %v694_v59, %v3215_v2  ;;  %v639_v10 = vadd.f32 %v638_v8, %v3209_v52 }
  0xfb   : > { %725 = vst [vmem:[#allocation4 + $0xd0] sm:$0xff] %v666_v58 }
  0xfc   : > { %726 = vst [vmem:[#allocation4 + $0xd8] sm:$0xff] %v695_v6 }
  0xfd   : > { %727 = vst [vmem:[#allocation4 + $0xe0] sm:$0xff] %v610_v7 }
  0xfe   : > { %728 = vst [vmem:[#allocation4 + $0xe8] sm:$0xff] %v639_v10 }
 0x100   : > { %v667_v14 = vpop.f32.mrf.mxu2  ;;  %v944_v19 = vpop.f32.mrf.mxu0 }
 0x101   : > { %v668_v15 = vadd.f32 %v667_v14, %v3213_v62  ;;  %v696_v18 = vpop.f32.mrf.mxu3  ;;  %v957_v22 = vpop.f32.mrf.mxu1 }
 0x102   : > { %v697_v20 = vadd.f32 %v696_v18, %v3215_v2  ;;  %v1016_v18 = vpop.permute.xlu0 %1015 }
 0x103   : > { %729 = vst [vmem:[#allocation4 + $0xf0] sm:$0xff] %v668_v15  ;;  %vm1017_vm4 = vcmp.eq.s32.totalorder %v1016_v18, 1 }
 0x104   : > { %730 = vst [vmem:[#allocation4 + $0xf8] sm:$0xff] %v697_v20  ;;  %vm2343_vm5 = vmpackc.low %vm1017_vm4, %vm1017_vm4 }
 0x108   : > { %v970_v26 = vpop.f32.mrf.mxu2  ;;  %v946_v51 = vpop.f32.mrf.mxu0 }
 0x109   : > { %v983_v27 = vpop.f32.mrf.mxu3  ;;  %v959_v32 = vpop.f32.mrf.mxu1 }
 0x10b   : > { %v770_v52 = vld [vmem:[%s769_s14] sm:$0xff]  ;;  %v771_v34 = vld [vmem:[%s769_s14 + $0x8] sm:$0xff]  ;;  %v772_v42 = vld [vmem:[%s769_s14 + $0x10] sm:$0xff] }
 0x10c   : > { %v987_v39 = vadd.f32 %v944_v19, %v770_v52  ;;  %v988_v40 = vadd.f32 %v957_v22, %v771_v34  ;;  %v773_v43 = vld [vmem:[%s769_s14 + $0x18] sm:$0xff]  ;;  %v989_v47 = vadd.f32 %v970_v26, %v772_v42  ;;  %s1870_s14 = scalar_lea.vmem %s3252_s27, %s2247_s13 [#allocation11] }
 0x10d   : > { %v990_v2 = vadd.f32 %v983_v27, %v773_v43  ;;  %v2237_v43 = vld [vmem:[%s1858_s20 + $0x28] sm:$0xff] }
 0x10e   : > { %v991_v62 = vmul.f32 0.5, %v987_v39  ;;  %v995_v46 = vmul.f32 0.5, %v988_v40  ;;  %v2236_v40 = vld [vmem:[%s1858_s20 + $0x20] sm:$0xff] }
 0x10f   : > { %v1000_v56 = vmul.f32 0.5, %v990_v2  ;;  %v1209_v2 = vstv %s1125_s16  ;;  %s2254_s16 = sshll.u32 %s2729_s24, 2 }
 0x110   : > { %2449 = vtanh.f32 %v991_v62  ;;  %v972_v48 = vpop.f32.mrf.mxu2  ;;  %vm1210_vm6 = vcmp.gt.s32.totalorder %v3124_v33, %v1209_v2 }
 0x111   : > { %2451 = vtanh.f32 %v995_v46  ;;  %v985_v50 = vpop.f32.mrf.mxu3 }
 0x112   : > { %2453 = vtanh.f32 %v989_v47 }
 0x113   : > { %2455 = vtanh.f32 %v1000_v56  ;;  %v1211_v56 = vsel %vm1210_vm6, 1, %v2744_v38 }
 0x114   : > { %1213 = vperm.xlu1 %2447, %v1211_v56  }
 0x116   : > { %v2450_v58 = vpop.eup %2449 }
 0x117   : > { %v2452_v59 = vpop.eup %2451  ;;  %v993_v61 = vadd.f32 1.0, %v2450_v58  ;;  %v1307_v58 = vstv %s1223_s28  ;;  %s2342_s28 = sshll.u32 %s3391_s11, 5 }
 0x118   : > { %v997_v6 = vadd.f32 1.0, %v2452_v59  ;;  %v2454_v8 = vpop.eup %2453  ;;  %v2238_v59 = vld [vmem:[%s1858_s20 + $0x30] sm:$0xff]  ;;  %vm1308_vm7 = vcmp.gt.s32.totalorder %v3124_v33, %v1307_v58  ;;  %s1324_s29 = scalar_lea.vmem [#allocation4], %s2342_s28  ;;  %s2283_s28 = sshll.u32 %s2729_s24, 3 }
 0x119   : > { %v994_v7 = vmul.f32 0.5, %v993_v61  ;;  %v2456_v19 = vpop.eup %2455 }
 0x11a   : > { %v998_v10 = vmul.f32 0.5, %v997_v6  ;;  %v1002_v26 = vadd.f32 1.0, %v2456_v19  ;;  %v2239_v6 = vld [vmem:[%s1858_s20 + $0x38] sm:$0xff]  ;;  %v1309_v19 = vsel %vm1308_vm7, 1, %v2744_v38  ;;  %s1876_s20 = scalar_lea.vmem %s3252_s27, %s2254_s16 [#allocation11] }
 0x11b   : > { %v1005_v14 = vmul.f32 %v2454_v8, %v994_v7 }
 0x11c   : > { %v1004_v15 = vmul.f32 0.0, %v998_v10  ;;  %v1003_v51 = vmul.f32 0.5, %v1002_v26  ;;  %1311 = vperm.xlu1 %2447, %v1309_v19  }
 0x11e   : > { %v1006_v20 = vadd.f32 %v1005_v14, %v1004_v15 }
 0x120   : > { %2457 = vtanh.f32 %v1006_v20  ;;  %v3248_v22 = vsel %vm1017_vm4, %v1006_v20, 0.0 }
 0x126   : > { %v2458_v27 = vpop.eup %2457 }
 0x127   : > { %v1008_v32 = vmul.f32 %v2458_v27, %v1003_v51  ;;  %v1702_v27 = vstv %s1618_s30  ;;  %s2258_s30 = sshll.u32 %s3391_s11, 2 }
 0x128   : > { %vm1703_vm8 = vcmp.gt.s32.totalorder %v3124_v33, %v1702_v27  ;;  %v2245_v27 = vld [vmem:[%s1866_s19 + $0x50] sm:$0xff]  ;;  %s1415_s15 = scalar_lea.vmem %s3252_s27, %s2258_s30 [#allocation11] }
 0x129   : > { %v3255_v52 = vsel %vm1017_vm4, %v1008_v32, 0.0  ;;  %v2344_v34 = vpack.c.bf16 %v1008_v32, %v1008_v32 }
 0x12a   : > { %v1019_v39 = vpack.c.bf16 %v3255_v52, %v3255_v52 }
 0x12b   : > { %2345 = vmatmul.msk.bf16.vlgmr.msra.gmra.mxu0 %vm2343_vm5, %v2344_v34  ;;  %2348 = vmatmul.msk.bf16.vlgmr.msra.gmra.mxu1 %vm2343_vm5, %v2344_v34 }
 0x12c   : > { %1022 = vst [vmem:[%s1021_s9] sm:$0xf] %v1019_v39  ;;  %2351 = vmatmul.msk.bf16.vlgmr.msra.gmra.mxu2 %vm2343_vm5, %v2344_v34  ;;  %2354 = vmatmul.msk.bf16.vlgmr.msra.gmra.mxu3 %vm2343_vm5, %v2344_v34  ;;  %s1873_s9 = scalar_lea.vmem [#allocation4], %s2249_s8 }
 0x12d   : > { %1232 = vmatpush.bf16.msra.mxu0 %v2949_v53  ;;  %1245 = vmatpush.bf16.msra.mxu1 %v2954_v57 }
 0x12e   : > { %1258 = vmatpush.bf16.msra.mxu2 %v2961_v63  ;;  %1271 = vmatpush.bf16.msra.mxu3 %v2964_v0 }
 0x131   : > { %1233 = vmatpush.bf16.msra.mxu0 %v2966_v1  ;;  %1246 = vmatpush.bf16.msra.mxu1 %v2973_v5 }
 0x132   : > { %1259 = vmatpush.bf16.msra.mxu2 %v2984_v11  ;;  %1272 = vmatpush.bf16.msra.mxu3 %v2988_v12 }
 0x135   : > { %1234 = vmatpush.bf16.msra.mxu0 %v2990_v13  ;;  %1247 = vmatpush.bf16.msra.mxu1 %v2996_v17 }
 0x136   : > { %1260 = vmatpush.bf16.msra.mxu2 %v3004_v23  ;;  %1273 = vmatpush.bf16.msra.mxu3 %v3008_v24 }
 0x139   : > { %1235 = vmatpush.bf16.msra.mxu0 %v3010_v25  ;;  %1248 = vmatpush.bf16.msra.mxu1 %v3016_v29 }
 0x13a   : > { %1261 = vmatpush.bf16.msra.mxu2 %v3024_v35  ;;  %1274 = vmatpush.bf16.msra.mxu3 %v3028_v36 }
 0x13d   : > { %1236 = vmatpush.bf16.msra.mxu0 %v3030_v37  ;;  %1249 = vmatpush.bf16.msra.mxu1 %v3035_v41 }
 0x13e   : > { %1262 = vmatpush.bf16.msra.mxu2 %v3040_v44  ;;  %1275 = vmatpush.bf16.msra.mxu3 %v3044_v45 }
 0x141   : > { %1237 = vmatpush.bf16.msra.mxu0 %v3056_v49  ;;  %1250 = vmatpush.bf16.msra.mxu1 %v3061_v54 }
 0x142   : > { %1263 = vmatpush.bf16.msra.mxu2 %v3063_v55  ;;  %1276 = vmatpush.bf16.msra.mxu3 %v3069_v60 }
 0x145   : > { %1238 = vmatpush.bf16.msra.mxu0 %v3076_v3  ;;  %1251 = vmatpush.bf16.msra.mxu1 %v3078_v4 }
 0x146   : > { %1264 = vmatpush.bf16.msra.mxu2 %v3084_v9  ;;  %1277 = vmatpush.bf16.msra.mxu3 %v3089_v16 }
 0x149   : > { %1239 = vmatpush.bf16.msra.mxu0 %v3095_v21  ;;  %1252 = vmatpush.bf16.msra.mxu1 %v3102_v28 }
 0x14a   : > { %1265 = vmatpush.bf16.msra.mxu2 %v3104_v30  ;;  %1278 = vmatpush.bf16.msra.mxu3 %v3107_v31 }
 0x1a8   : > { %v1044_v42 = vpop.f32.mrf.mxu0  ;;  %v1057_v62 = vpop.f32.mrf.mxu1 }
 0x1a9   : > { %v1087_v46 = vadd.f32 %v2236_v40, %v1044_v42  ;;  %v1088_v47 = vadd.f32 %v2237_v43, %v1057_v62 }
 0x1ab   : > { %v1091_v48 = vmul.f32 0.5, %v1087_v46  ;;  %v1095_v50 = vmul.f32 0.5, %v1088_v47  ;;  %v1704_v47 = vsel %vm1703_vm8, 1, %v2744_v38 }
 0x1ac   : > { %1706 = vperm.xlu1 %2447, %v1704_v47  }
 0x1ad   : > { %2459 = vtanh.f32 %v1091_v48  ;;  %v1115_v48 = vpop.permute.xlu0 %1114 }
 0x1ae   : > { %2461 = vtanh.f32 %v1095_v50  ;;  %vm1116_vm9 = vcmp.eq.s32.totalorder %v1115_v48, 1 }
 0x1af   : > { %v1070_v61 = vpop.f32.mrf.mxu2  ;;  %v1083_v7 = vpop.f32.mrf.mxu3 }
 0x1b0   : > { %v1089_v8 = vadd.f32 %v2238_v59, %v1070_v61  ;;  %v1090_v10 = vadd.f32 %v2239_v6, %v1083_v7  ;;  %v1046_v14 = vpop.f32.mrf.mxu0  ;;  %v1059_v15 = vpop.f32.mrf.mxu1 }
 0x1b1   : > { %v2244_v15 = vld [vmem:[%s1866_s19 + $0x48] sm:$0xff] }
 0x1b2   : > { %2463 = vtanh.f32 %v1089_v8  ;;  %v1100_v18 = vmul.f32 0.5, %v1090_v10 }
 0x1b3   : > { %v2460_v20 = vpop.eup %2459 }
 0x1b4   : > { %v2462_v26 = vpop.eup %2461  ;;  %v1093_v51 = vadd.f32 1.0, %v2460_v20  ;;  %2465 = vtanh.f32 %v1100_v18 }
 0x1b5   : > { %v1097_v32 = vadd.f32 1.0, %v2462_v26 }
 0x1b6   : > { %v1094_v34 = vmul.f32 0.5, %v1093_v51 }
 0x1b7   : > { %v1098_v39 = vmul.f32 0.5, %v1097_v32  ;;  %v1072_v40 = vpop.f32.mrf.mxu2  ;;  %v1085_v42 = vpop.f32.mrf.mxu3 }
 0x1b8   : > { %v2464_v43 = vpop.eup %2463 }
 0x1b9   : > { %v1104_v62 = vmul.f32 %v1098_v39, %v3248_v22  ;;  %v1105_v46 = vmul.f32 %v2464_v43, %v1094_v34  ;;  %v2246_v34 = vld [vmem:[%s1866_s19 + $0x58] sm:$0xff] }
 0x1ba   : > { %v2466_v2 = vpop.eup %2465 }
 0x1bb   : > { %v1106_v50 = vadd.f32 %v1105_v46, %v1104_v62  ;;  %v1102_v58 = vadd.f32 1.0, %v2466_v2 }
 0x1bd   : > { %2467 = vtanh.f32 %v1106_v50  ;;  %v3303_v56 = vsel %vm1116_vm9, %v1106_v50, %v3248_v22  ;;  %v1103_v59 = vmul.f32 0.5, %v1102_v58  ;;  %v2243_v22 = vld [vmem:[%s1866_s19 + $0x40] sm:$0xff]  ;;  %s2264_s19 = smul.u32 4294967284, %s2729_s24 }
 0x1bf   : > { %s1888_s13 = scalar_lea.vmem %s3252_s27, %s2264_s19 [#allocation11] }
 0x1c3   : > { %v2468_v61 = vpop.eup %2467 }
 0x1c4   : > { %v1108_v6 = vmul.f32 %v2468_v61, %v1103_v59 }
 0x1c6   : > { %v1117_v7 = vsel %vm1116_vm9, %v1108_v6, 0.0  ;;  %v3308_v8 = vsel %vm1116_vm9, %v1108_v6, %v3255_v52 }
 0x1c7   : > { %v1118_v10 = vpack.c.bf16 %v1117_v7, %v1117_v7  ;;  %v1133_v14 = vpack.c.bf16 %v3308_v8, %v3308_v8 }
 0x1c9   : > { %2241 = vst [vmem:[%s1862_s7 + $0x4] sm:$0xf] %v1118_v10  ;;  %1142 = vmatmul.bf16.vlgmr.msrb.gmra.mxu0 %v1133_v14  ;;  %1155 = vmatmul.bf16.vlgmr.msrb.gmra.mxu1 %v1133_v14  ;;  %s2259_s7 = smul.u32 4294967200, %s2729_s24 }
 0x1ca   : > { %1168 = vmatmul.bf16.vlgmr.msrb.gmra.mxu2 %v1133_v14  ;;  %1181 = vmatmul.bf16.vlgmr.msrb.gmra.mxu3 %v1133_v14  ;;  %v1214_v14 = vpop.permute.xlu1 %1213 }
 0x1cb   : > { %1330 = vmatpush.bf16.msrb.mxu0 %v2949_v53  ;;  %1343 = vmatpush.bf16.msrb.mxu1 %v2954_v57  ;;  %vm1215_vm10 = vcmp.eq.s32.totalorder %v1214_v14, 1  ;;  %s1884_s18 = scalar_lea.vmem [#allocation4], %s2259_s7  ;;  %s1745_s7 = scalar_lea.hbm %s3572_s5, %s2254_s16 }
 0x1cc   : > { %1356 = vmatpush.bf16.msrb.mxu2 %v2961_v63  ;;  %1369 = vmatpush.bf16.msrb.mxu3 %v2964_v0 }
 0x1cf   : > { %1331 = vmatpush.bf16.msrb.mxu0 %v2966_v1  ;;  %1344 = vmatpush.bf16.msrb.mxu1 %v2973_v5 }
 0x1d0   : > { %1357 = vmatpush.bf16.msrb.mxu2 %v2984_v11  ;;  %1370 = vmatpush.bf16.msrb.mxu3 %v2988_v12 }
 0x1d3   : > { %1332 = vmatpush.bf16.msrb.mxu0 %v2990_v13  ;;  %1345 = vmatpush.bf16.msrb.mxu1 %v2996_v17 }
 0x1d4   : > { %1358 = vmatpush.bf16.msrb.mxu2 %v3004_v23  ;;  %1371 = vmatpush.bf16.msrb.mxu3 %v3008_v24 }
 0x1d7   : > { %1333 = vmatpush.bf16.msrb.mxu0 %v3010_v25  ;;  %1346 = vmatpush.bf16.msrb.mxu1 %v3016_v29 }
 0x1d8   : > { %1359 = vmatpush.bf16.msrb.mxu2 %v3024_v35  ;;  %1372 = vmatpush.bf16.msrb.mxu3 %v3028_v36 }
 0x1db   : > { %1334 = vmatpush.bf16.msrb.mxu0 %v3030_v37  ;;  %1347 = vmatpush.bf16.msrb.mxu1 %v3035_v41 }
 0x1dc   : > { %1360 = vmatpush.bf16.msrb.mxu2 %v3040_v44  ;;  %1373 = vmatpush.bf16.msrb.mxu3 %v3044_v45 }
 0x1df   : > { %1335 = vmatpush.bf16.msrb.mxu0 %v3056_v49  ;;  %1348 = vmatpush.bf16.msrb.mxu1 %v3061_v54 }
 0x1e0   : > { %1361 = vmatpush.bf16.msrb.mxu2 %v3063_v55  ;;  %1374 = vmatpush.bf16.msrb.mxu3 %v3069_v60 }
 0x1e3   : > { %1336 = vmatpush.bf16.msrb.mxu0 %v3076_v3  ;;  %1349 = vmatpush.bf16.msrb.mxu1 %v3078_v4 }
 0x1e4   : > { %1362 = vmatpush.bf16.msrb.mxu2 %v3084_v9  ;;  %1375 = vmatpush.bf16.msrb.mxu3 %v3089_v16 }
 0x1e7   : > { %1337 = vmatpush.bf16.msrb.mxu0 %v3095_v21  ;;  %1350 = vmatpush.bf16.msrb.mxu1 %v3102_v28 }
 0x1e8   : > { %1363 = vmatpush.bf16.msrb.mxu2 %v3104_v30  ;;  %1376 = vmatpush.bf16.msrb.mxu3 %v3107_v31 }
 0x246   : > { %v1143_v52 = vpop.f32.mrf.mxu0  ;;  %v1156_v18 = vpop.f32.mrf.mxu1 }
 0x247   : > { %v1186_v19 = vadd.f32 %v2243_v22, %v1143_v52  ;;  %v1187_v20 = vadd.f32 %v2244_v15, %v1156_v18 }
 0x249   : > { %v1190_v26 = vmul.f32 0.5, %v1186_v19  ;;  %v1194_v51 = vmul.f32 0.5, %v1187_v20 }
 0x24b   : > { %2469 = vtanh.f32 %v1190_v26 }
 0x24c   : > { %2471 = vtanh.f32 %v1194_v51 }
 0x24d   : > { %v1169_v32 = vpop.f32.mrf.mxu2  ;;  %v1182_v39 = vpop.f32.mrf.mxu3 }
 0x24e   : > { %v1188_v40 = vadd.f32 %v2245_v27, %v1169_v32  ;;  %v1189_v42 = vadd.f32 %v2246_v34, %v1182_v39  ;;  %v1145_v43 = vpop.f32.mrf.mxu0  ;;  %v1158_v62 = vpop.f32.mrf.mxu1 }
 0x250   : > { %2473 = vtanh.f32 %v1188_v40  ;;  %v1199_v46 = vmul.f32 0.5, %v1189_v42  ;;  %v2251_v40 = vld [vmem:[%s1873_s9 + $0x68] sm:$0xff] }
 0x251   : > { %v2470_v47 = vpop.eup %2469 }
 0x252   : > { %v2472_v2 = vpop.eup %2471  ;;  %v1192_v48 = vadd.f32 1.0, %v2470_v47  ;;  %2475 = vtanh.f32 %v1199_v46  ;;  %v1405_v46 = vstv %s3391_s11  ;;  %s2273_s11 = smul.u32 4294967072, %s2729_s24 }
 0x253   : > { %v1196_v50 = vadd.f32 1.0, %v2472_v2  ;;  %vm1406_vm11 = vcmp.gt.s32.totalorder %v3124_v33, %v1405_v46 }
 0x254   : > { %v1193_v58 = vmul.f32 0.5, %v1192_v48  ;;  %v1407_v48 = vsel %vm1406_vm11, 1, %v2744_v38 }
 0x255   : > { %v1197_v59 = vmul.f32 0.5, %v1196_v50  ;;  %v1171_v61 = vpop.f32.mrf.mxu2  ;;  %v1184_v6 = vpop.f32.mrf.mxu3  ;;  %v1504_v50 = vstv %s1420_s17  ;;  %1409 = vperm.xlu2 %2448, %v1407_v48   ;;  %s1900_s17 = scalar_lea.vmem [#allocation4], %s2273_s11 }
 0x256   : > { %v2474_v7 = vpop.eup %2473  ;;  %v2253_v61 = vld [vmem:[%s1873_s9 + $0x78] sm:$0xff]  ;;  %vm1505_vm12 = vcmp.gt.s32.totalorder %v3124_v33, %v1504_v50 }
 0x257   : > { %v1204_v10 = vmul.f32 %v2474_v7, %v1193_v58  ;;  %v1203_v22 = vmul.f32 %v1197_v59, %v3303_v56  ;;  %v2252_v58 = vld [vmem:[%s1873_s9 + $0x70] sm:$0xff] }
 0x258   : > { %v2476_v52 = vpop.eup %2475 }
 0x259   : > { %v1205_v15 = vadd.f32 %v1204_v10, %v1203_v22  ;;  %v1201_v19 = vadd.f32 1.0, %v2476_v52 }
 0x25b   : > { %2477 = vtanh.f32 %v1205_v15  ;;  %v3347_v18 = vsel %vm1215_vm10, %v1205_v15, %v3303_v56  ;;  %v1202_v20 = vmul.f32 0.5, %v1201_v19  ;;  %v2250_v56 = vld [vmem:[%s1873_s9 + $0x60] sm:$0xff]  ;;  %v1506_v15 = vsel %vm1505_vm12, 1, %v2744_v38  ;;  %s1896_s9 = scalar_lea.vmem %s3252_s27, %s2271_s23 [#allocation11] }
 0x25d   : > { %1508 = vperm.xlu2 %2448, %v1506_v15   ;;  %v1327_v15 = vld [vmem:[%s1324_s29 + $0x10] sm:$0xff] }
 0x261   : > { %v2478_v26 = vpop.eup %2477 }
 0x262   : > { %v1207_v51 = vmul.f32 %v2478_v26, %v1202_v20 }
 0x264   : > { %v1216_v27 = vsel %vm1215_vm10, %v1207_v51, 0.0  ;;  %v3352_v32 = vsel %vm1215_vm10, %v1207_v51, %v3308_v8 }
 0x265   : > { %v1217_v34 = vpack.c.bf16 %v1216_v27, %v1216_v27  ;;  %v1231_v39 = vpack.c.bf16 %v3352_v32, %v3352_v32 }
 0x267   : > { %2248 = vst [vmem:[%s1870_s14 + $0x8] sm:$0xf] %v1217_v34  ;;  %1240 = vmatmul.bf16.vlgmr.msra.gmra.mxu0 %v1231_v39  ;;  %1253 = vmatmul.bf16.vlgmr.msra.gmra.mxu1 %v1231_v39  ;;  %s2266_s14 = smul.u32 4294967136, %s2729_s24 }
 0x268   : > { %1266 = vmatmul.bf16.vlgmr.msra.gmra.mxu2 %v1231_v39  ;;  %1279 = vmatmul.bf16.vlgmr.msra.gmra.mxu3 %v1231_v39 }
 0x269   : > { %1429 = vmatpush.bf16.msra.mxu0 %v2949_v53  ;;  %1442 = vmatpush.bf16.msra.mxu1 %v2954_v57  ;;  %s1892_s8 = scalar_lea.vmem [#allocation4], %s2266_s14  ;;  %s1746_s14 = sshll.u32 %s3252_s27, 4  ;;  %s3514_s14 = int_to_ptr.vmem [resolvable:$true] %s1746_s14 }
 0x26a   : > { %1455 = vmatpush.bf16.msra.mxu2 %v2961_v63  ;;  %1468 = vmatpush.bf16.msra.mxu3 %v2964_v0 }
 0x26d   : > { %1430 = vmatpush.bf16.msra.mxu0 %v2966_v1  ;;  %1443 = vmatpush.bf16.msra.mxu1 %v2973_v5 }
 0x26e   : > { %1456 = vmatpush.bf16.msra.mxu2 %v2984_v11  ;;  %1469 = vmatpush.bf16.msra.mxu3 %v2988_v12 }
 0x271   : > { %1431 = vmatpush.bf16.msra.mxu0 %v2990_v13  ;;  %1444 = vmatpush.bf16.msra.mxu1 %v2996_v17 }
 0x272   : > { %1457 = vmatpush.bf16.msra.mxu2 %v3004_v23  ;;  %1470 = vmatpush.bf16.msra.mxu3 %v3008_v24 }
 0x275   : > { %1432 = vmatpush.bf16.msra.mxu0 %v3010_v25  ;;  %1445 = vmatpush.bf16.msra.mxu1 %v3016_v29 }
 0x276   : > { %1458 = vmatpush.bf16.msra.mxu2 %v3024_v35  ;;  %1471 = vmatpush.bf16.msra.mxu3 %v3028_v36 }
 0x279   : > { %1433 = vmatpush.bf16.msra.mxu0 %v3030_v37  ;;  %1446 = vmatpush.bf16.msra.mxu1 %v3035_v41 }
 0x27a   : > { %1459 = vmatpush.bf16.msra.mxu2 %v3040_v44  ;;  %1472 = vmatpush.bf16.msra.mxu3 %v3044_v45 }
 0x27d   : > { %1434 = vmatpush.bf16.msra.mxu0 %v3056_v49  ;;  %1447 = vmatpush.bf16.msra.mxu1 %v3061_v54 }
 0x27e   : > { %1460 = vmatpush.bf16.msra.mxu2 %v3063_v55  ;;  %1473 = vmatpush.bf16.msra.mxu3 %v3069_v60 }
 0x281   : > { %1435 = vmatpush.bf16.msra.mxu0 %v3076_v3  ;;  %1448 = vmatpush.bf16.msra.mxu1 %v3078_v4 }
 0x282   : > { %1461 = vmatpush.bf16.msra.mxu2 %v3084_v9  ;;  %1474 = vmatpush.bf16.msra.mxu3 %v3089_v16 }
 0x285   : > { %1436 = vmatpush.bf16.msra.mxu0 %v3095_v21  ;;  %1449 = vmatpush.bf16.msra.mxu1 %v3102_v28 }
 0x286   : > { %1462 = vmatpush.bf16.msra.mxu2 %v3104_v30  ;;  %1475 = vmatpush.bf16.msra.mxu3 %v3107_v31 }
 0x2e4   : > { %v1241_v8 = vpop.f32.mrf.mxu0  ;;  %v1254_v42 = vpop.f32.mrf.mxu1 }
 0x2e5   : > { %v1284_v43 = vadd.f32 %v2250_v56, %v1241_v8  ;;  %v1285_v62 = vadd.f32 %v2251_v40, %v1254_v42 }
 0x2e7   : > { %v1288_v47 = vmul.f32 0.5, %v1284_v43  ;;  %v1292_v2 = vmul.f32 0.5, %v1285_v62  ;;  %v1312_v43 = vpop.permute.xlu1 %1311 }
 0x2e8   : > { %vm1313_vm13 = vcmp.eq.s32.totalorder %v1312_v43, 1 }
 0x2e9   : > { %2479 = vtanh.f32 %v1288_v47 }
 0x2ea   : > { %2481 = vtanh.f32 %v1292_v2 }
 0x2eb   : > { %v1267_v59 = vpop.f32.mrf.mxu2  ;;  %v1280_v6 = vpop.f32.mrf.mxu3 }
 0x2ec   : > { %v1286_v7 = vadd.f32 %v2252_v58, %v1267_v59  ;;  %v1287_v10 = vadd.f32 %v2253_v61, %v1280_v6  ;;  %v1243_v14 = vpop.f32.mrf.mxu0  ;;  %v1256_v22 = vpop.f32.mrf.mxu1  ;;  %v1326_v6 = vld [vmem:[%s1324_s29 + $0x8] sm:$0xff] }
 0x2ee   : > { %2483 = vtanh.f32 %v1286_v7  ;;  %v1297_v52 = vmul.f32 0.5, %v1287_v10 }
 0x2ef   : > { %v2480_v19 = vpop.eup %2479 }
 0x2f0   : > { %v2482_v20 = vpop.eup %2481  ;;  %v1290_v26 = vadd.f32 1.0, %v2480_v19  ;;  %2485 = vtanh.f32 %v1297_v52 }
 0x2f1   : > { %v1294_v51 = vadd.f32 1.0, %v2482_v20  ;;  %v1328_v20 = vld [vmem:[%s1324_s29 + $0x18] sm:$0xff] }
 0x2f2   : > { %v1291_v27 = vmul.f32 0.5, %v1290_v26 }
 0x2f3   : > { %v1295_v34 = vmul.f32 0.5, %v1294_v51  ;;  %v1269_v39 = vpop.f32.mrf.mxu2  ;;  %v1282_v56 = vpop.f32.mrf.mxu3 }
 0x2f4   : > { %v2484_v33 = vpop.eup %2483 }
 0x2f5   : > { %v1301_v8 = vmul.f32 %v1295_v34, %v3347_v18  ;;  %v1302_v40 = vmul.f32 %v2484_v33, %v1291_v27 }
 0x2f6   : > { %v2486_v42 = vpop.eup %2485 }
 0x2f7   : > { %v1303_v38 = vadd.f32 %v1302_v40, %v1301_v8  ;;  %v1299_v46 = vadd.f32 1.0, %v2486_v42 }
 0x2f9   : > { %2487 = vtanh.f32 %v1303_v38  ;;  %v3400_v62 = vsel %vm1313_vm13, %v1303_v38, %v3347_v18  ;;  %v1300_v47 = vmul.f32 0.5, %v1299_v46  ;;  %v1325_v18 = vld [vmem:[%s1324_s29] sm:$0xff]  ;;  %v1410_v38 = vpop.permute.xlu2 %1409  ;;  %s2278_s29 = smul.u32 4294967268, %s2729_s24  ;;  %s1728_s24 = scalar_lea.sflag [#allocation13], %s2899_s2 }
 0x2fa   : > { %vm1411_vm14 = vcmp.eq.s32.totalorder %v1410_v38, 1 }
 0x2ff   : > { %v2488_v2 = vpop.eup %2487 }
 0x300   : > { %v1305_v48 = vmul.f32 %v2488_v2, %v1300_v47 }
 0x302   : > { %v1314_v50 = vsel %vm1313_vm13, %v1305_v48, 0.0  ;;  %v3407_v58 = vsel %vm1313_vm13, %v1305_v48, %v3352_v32 }
 0x303   : > { %v1315_v59 = vpack.c.bf16 %v1314_v50, %v1314_v50  ;;  %v1329_v61 = vpack.c.bf16 %v3407_v58, %v3407_v58 }
 0x305   : > { %2255 = vst [vmem:[%s1876_s20 + $0xc] sm:$0xf] %v1315_v59  ;;  %1338 = vmatmul.bf16.vlgmr.msrb.gmra.mxu0 %v1329_v61  ;;  %1351 = vmatmul.bf16.vlgmr.msrb.gmra.mxu1 %v1329_v61  ;;  %s2006_s20 = sshll.u32 %s2899_s2, 3 }
 0x306   : > { %1364 = vmatmul.bf16.vlgmr.msrb.gmra.mxu2 %v1329_v61  ;;  %1377 = vmatmul.bf16.vlgmr.msrb.gmra.mxu3 %v1329_v61  ;;  %s410_s23 = scalar_lea.vmem [#allocation12], %s2006_s20 }
 0x307   : > { %1528 = vmatpush.bf16.msrb.mxu0 %v2949_v53  ;;  %1541 = vmatpush.bf16.msrb.mxu1 %v2954_v57 }
 0x308   : > { %1554 = vmatpush.bf16.msrb.mxu2 %v2961_v63  ;;  %1567 = vmatpush.bf16.msrb.mxu3 %v2964_v0 }
 0x30b   : > { %1529 = vmatpush.bf16.msrb.mxu0 %v2966_v1  ;;  %1542 = vmatpush.bf16.msrb.mxu1 %v2973_v5 }
 0x30c   : > { %1555 = vmatpush.bf16.msrb.mxu2 %v2984_v11  ;;  %1568 = vmatpush.bf16.msrb.mxu3 %v2988_v12 }
 0x30f   : > { %1530 = vmatpush.bf16.msrb.mxu0 %v2990_v13  ;;  %1543 = vmatpush.bf16.msrb.mxu1 %v2996_v17 }
 0x310   : > { %1556 = vmatpush.bf16.msrb.mxu2 %v3004_v23  ;;  %1569 = vmatpush.bf16.msrb.mxu3 %v3008_v24 }
 0x313   : > { %1531 = vmatpush.bf16.msrb.mxu0 %v3010_v25  ;;  %1544 = vmatpush.bf16.msrb.mxu1 %v3016_v29 }
 0x314   : > { %1557 = vmatpush.bf16.msrb.mxu2 %v3024_v35  ;;  %1570 = vmatpush.bf16.msrb.mxu3 %v3028_v36 }
 0x317   : > { %1532 = vmatpush.bf16.msrb.mxu0 %v3030_v37  ;;  %1545 = vmatpush.bf16.msrb.mxu1 %v3035_v41 }
 0x318   : > { %1558 = vmatpush.bf16.msrb.mxu2 %v3040_v44  ;;  %1571 = vmatpush.bf16.msrb.mxu3 %v3044_v45 }
 0x31b   : > { %1533 = vmatpush.bf16.msrb.mxu0 %v3056_v49  ;;  %1546 = vmatpush.bf16.msrb.mxu1 %v3061_v54 }
 0x31c   : > { %1559 = vmatpush.bf16.msrb.mxu2 %v3063_v55  ;;  %1572 = vmatpush.bf16.msrb.mxu3 %v3069_v60 }
 0x31f   : > { %1534 = vmatpush.bf16.msrb.mxu0 %v3076_v3  ;;  %1547 = vmatpush.bf16.msrb.mxu1 %v3078_v4 }
 0x320   : > { %1560 = vmatpush.bf16.msrb.mxu2 %v3084_v9  ;;  %1573 = vmatpush.bf16.msrb.mxu3 %v3089_v16 }
 0x323   : > { %1535 = vmatpush.bf16.msrb.mxu0 %v3095_v21  ;;  %1548 = vmatpush.bf16.msrb.mxu1 %v3102_v28 }
 0x324   : > { %1561 = vmatpush.bf16.msrb.mxu2 %v3104_v30  ;;  %1574 = vmatpush.bf16.msrb.mxu3 %v3107_v31 }
 0x382   : > { %v1339_v32 = vpop.f32.mrf.mxu0  ;;  %v1352_v7 = vpop.f32.mrf.mxu1 }
 0x383   : > { %v1382_v10 = vadd.f32 %v1339_v32, %v1325_v18  ;;  %v1383_v14 = vadd.f32 %v1352_v7, %v1326_v6 }
 0x385   : > { %v1386_v22 = vmul.f32 0.5, %v1382_v10  ;;  %v1390_v52 = vmul.f32 0.5, %v1383_v14 }
 0x387   : > { %2489 = vtanh.f32 %v1386_v22 }
 0x388   : > { %2491 = vtanh.f32 %v1390_v52 }
 0x389   : > { %v1365_v19 = vpop.f32.mrf.mxu2  ;;  %v1378_v26 = vpop.f32.mrf.mxu3 }
 0x38a   : > { %v1384_v51 = vadd.f32 %v1365_v19, %v1327_v15  ;;  %v1385_v27 = vadd.f32 %v1378_v26, %v1328_v20  ;;  %v1341_v34 = vpop.f32.mrf.mxu0  ;;  %v1354_v39 = vpop.f32.mrf.mxu1 }
 0x38c   : > { %2493 = vtanh.f32 %v1384_v51  ;;  %v1395_v56 = vmul.f32 0.5, %v1385_v27 }
 0x38d   : > { %v2490_v33 = vpop.eup %2489 }
 0x38e   : > { %v2492_v8 = vpop.eup %2491  ;;  %v1388_v40 = vadd.f32 1.0, %v2490_v33  ;;  %2495 = vtanh.f32 %v1395_v56  ;;  %v2267_v56 = vld [vmem:[%s1892_s8 + $0xc0] sm:$0xff] }
 0x38f   : > { %v1392_v42 = vadd.f32 1.0, %v2492_v8  ;;  %v2268_v8 = vld [vmem:[%s1892_s8 + $0xc8] sm:$0xff] }
 0x390   : > { %v1389_v43 = vmul.f32 0.5, %v1388_v40 }
 0x391   : > { %v1393_v46 = vmul.f32 0.5, %v1392_v42  ;;  %v1367_v47 = vpop.f32.mrf.mxu2  ;;  %v1380_v2 = vpop.f32.mrf.mxu3 }
 0x392   : > { %v2494_v48 = vpop.eup %2493  ;;  %v2269_v47 = vld [vmem:[%s1892_s8 + $0xd0] sm:$0xff] }
 0x393   : > { %v1400_v50 = vmul.f32 %v2494_v48, %v1389_v43  ;;  %v1399_v59 = vmul.f32 %v1393_v46, %v3400_v62  ;;  %v2270_v48 = vld [vmem:[%s1892_s8 + $0xd8] sm:$0xff]  ;;  %s1748_s8 = sshll.u32 %s1745_s7, 4  ;;  %s3516_s8 = int_to_ptr.hbm [resolvable:$true] %s1748_s8 }
 0x394   : > { %v2496_v61 = vpop.eup %2495 }
 0x395   : > { %v1401_v18 = vadd.f32 %v1400_v50, %v1399_v59  ;;  %v1397_v6 = vadd.f32 1.0, %v2496_v61 }
 0x397   : > { %2497 = vtanh.f32 %v1401_v18  ;;  %v3446_v32 = vsel %vm1411_vm14, %v1401_v18, %v3400_v62  ;;  %v1398_v7 = vmul.f32 0.5, %v1397_v6 }
 0x39d   : > { %v2498_v10 = vpop.eup %2497 }
 0x39e   : > { %v1403_v14 = vmul.f32 %v2498_v10, %v1398_v7 }
 0x3a0   : > { %v1412_v22 = vsel %vm1411_vm14, %v1403_v14, 0.0  ;;  %v3451_v52 = vsel %vm1411_vm14, %v1403_v14, %v3407_v58 }
 0x3a1   : > { %v1413_v15 = vpack.c.bf16 %v1412_v22, %v1412_v22  ;;  %v1428_v19 = vpack.c.bf16 %v3451_v52, %v3451_v52 }
 0x3a3   : > { %1416 = vst [vmem:[%s1415_s15] sm:$0xf] %v1413_v15  ;;  %1437 = vmatmul.bf16.vlgmr.msra.gmra.mxu0 %v1428_v19  ;;  %1450 = vmatmul.bf16.vlgmr.msra.gmra.mxu1 %v1428_v19 }
 0x3a4   : > { %1463 = vmatmul.bf16.vlgmr.msra.gmra.mxu2 %v1428_v19  ;;  %1476 = vmatmul.bf16.vlgmr.msra.gmra.mxu3 %v1428_v19 }
 0x3a5   : > { %1627 = vmatpush.bf16.msra.mxu0 %v2949_v53  ;;  %1640 = vmatpush.bf16.msra.mxu1 %v2954_v57  ;;  %v2260_v53 = vld [vmem:[%s1884_s18 + $0xa0] sm:$0xff] }
 0x3a6   : > { %1653 = vmatpush.bf16.msra.mxu2 %v2961_v63  ;;  %1666 = vmatpush.bf16.msra.mxu3 %v2964_v0  ;;  %v2261_v63 = vld [vmem:[%s1884_s18 + $0xa8] sm:$0xff] }
 0x3a9   : > { %1628 = vmatpush.bf16.msra.mxu0 %v2966_v1  ;;  %1641 = vmatpush.bf16.msra.mxu1 %v2973_v5 }
 0x3aa   : > { %1654 = vmatpush.bf16.msra.mxu2 %v2984_v11  ;;  %1667 = vmatpush.bf16.msra.mxu3 %v2988_v12 }
 0x3ad   : > { %1629 = vmatpush.bf16.msra.mxu0 %v2990_v13  ;;  %1642 = vmatpush.bf16.msra.mxu1 %v2996_v17  ;;  %v2262_v13 = vld [vmem:[%s1884_s18 + $0xb0] sm:$0xff] }
 0x3ae   : > { %1655 = vmatpush.bf16.msra.mxu2 %v3004_v23  ;;  %1668 = vmatpush.bf16.msra.mxu3 %v3008_v24  ;;  %v2263_v23 = vld [vmem:[%s1884_s18 + $0xb8] sm:$0xff] }
 0x3b1   : > { %1630 = vmatpush.bf16.msra.mxu0 %v3010_v25  ;;  %1643 = vmatpush.bf16.msra.mxu1 %v3016_v29 }
 0x3b2   : > { %1656 = vmatpush.bf16.msra.mxu2 %v3024_v35  ;;  %1669 = vmatpush.bf16.msra.mxu3 %v3028_v36 }
 0x3b5   : > { %1631 = vmatpush.bf16.msra.mxu0 %v3030_v37  ;;  %1644 = vmatpush.bf16.msra.mxu1 %v3035_v41 }
 0x3b6   : > { %1657 = vmatpush.bf16.msra.mxu2 %v3040_v44  ;;  %1670 = vmatpush.bf16.msra.mxu3 %v3044_v45 }
 0x3b9   : > { %1632 = vmatpush.bf16.msra.mxu0 %v3056_v49  ;;  %1645 = vmatpush.bf16.msra.mxu1 %v3061_v54 }
 0x3ba   : > { %1658 = vmatpush.bf16.msra.mxu2 %v3063_v55  ;;  %1671 = vmatpush.bf16.msra.mxu3 %v3069_v60 }
 0x3bd   : > { %1633 = vmatpush.bf16.msra.mxu0 %v3076_v3  ;;  %1646 = vmatpush.bf16.msra.mxu1 %v3078_v4 }
 0x3be   : > { %1659 = vmatpush.bf16.msra.mxu2 %v3084_v9  ;;  %1672 = vmatpush.bf16.msra.mxu3 %v3089_v16  ;;  %v1509_v9 = vpop.permute.xlu2 %1508 }
 0x3bf   : > { %vm1510_vm15 = vcmp.eq.s32.totalorder %v1509_v9, 1  ;;  %v2277_v9 = vld [vmem:[%s1900_s17 + $0xf8] sm:$0xff] }
 0x3c1   : > { %1634 = vmatpush.bf16.msra.mxu0 %v3095_v21  ;;  %1647 = vmatpush.bf16.msra.mxu1 %v3102_v28 }
 0x3c2   : > { %1660 = vmatpush.bf16.msra.mxu2 %v3104_v30  ;;  %1673 = vmatpush.bf16.msra.mxu3 %v3107_v31 }
 0x420   : > { %v1438_v57 = vpop.f32.mrf.mxu0  ;;  %v1451_v0 = vpop.f32.mrf.mxu1 }
 0x421   : > { %v1481_v1 = vadd.f32 %v2260_v53, %v1438_v57  ;;  %v1482_v5 = vadd.f32 %v2261_v63, %v1451_v0  ;;  %v1608_v63 = vpop.permute.xlu0 %1607 }
 0x422   : > { %vm1609_vm0 = vcmp.eq.s32.totalorder %v1608_v63, 1 }
 0x423   : > { %v1485_v11 = vmul.f32 0.5, %v1481_v1  ;;  %v1489_v12 = vmul.f32 0.5, %v1482_v5 }
 0x425   : > { %2499 = vtanh.f32 %v1485_v11 }
 0x426   : > { %2501 = vtanh.f32 %v1489_v12 }
 0x427   : > { %v1464_v17 = vpop.f32.mrf.mxu2  ;;  %v1477_v24 = vpop.f32.mrf.mxu3 }
 0x428   : > { %v1483_v25 = vadd.f32 %v2262_v13, %v1464_v17  ;;  %v1484_v29 = vadd.f32 %v2263_v23, %v1477_v24  ;;  %v1440_v35 = vpop.f32.mrf.mxu0  ;;  %v1453_v36 = vpop.f32.mrf.mxu1 }
 0x42a   : > { %2503 = vtanh.f32 %v1483_v25  ;;  %v1494_v37 = vmul.f32 0.5, %v1484_v29 }
 0x42b   : > { %v2500_v41 = vpop.eup %2499 }
 0x42c   : > { %v2502_v44 = vpop.eup %2501  ;;  %v1487_v45 = vadd.f32 1.0, %v2500_v41  ;;  %2505 = vtanh.f32 %v1494_v37  ;;  %v2274_v37 = vld [vmem:[%s1900_s17 + $0xe0] sm:$0xff] }
 0x42d   : > { %v1491_v49 = vadd.f32 1.0, %v2502_v44  ;;  %v2275_v44 = vld [vmem:[%s1900_s17 + $0xe8] sm:$0xff] }
 0x42e   : > { %v1488_v54 = vmul.f32 0.5, %v1487_v45 }
 0x42f   : > { %v1492_v55 = vmul.f32 0.5, %v1491_v49  ;;  %v1466_v60 = vpop.f32.mrf.mxu2  ;;  %v1479_v3 = vpop.f32.mrf.mxu3 }
 0x430   : > { %v2504_v4 = vpop.eup %2503  ;;  %v2276_v3 = vld [vmem:[%s1900_s17 + $0xf0] sm:$0xff]  ;;  %s1904_s17 = scalar_lea.vmem %s3252_s27, %s2278_s29 [#allocation11]  ;;  %s2639_s29 = scalar_lea.hbm %s3573_s6, 16 }
 0x431   : > { %v1498_v16 = vmul.f32 %v1492_v55, %v3446_v32  ;;  %v1499_v21 = vmul.f32 %v2504_v4, %v1488_v54 }
 0x432   : > { %v2506_v28 = vpop.eup %2505 }
 0x433   : > { %v1500_v30 = vadd.f32 %v1499_v21, %v1498_v16  ;;  %v1496_v62 = vadd.f32 1.0, %v2506_v28 }
 0x435   : > { %2507 = vtanh.f32 %v1500_v30  ;;  %v1517_v31 = vsel %vm1510_vm15, %v1500_v30, %v3446_v32  ;;  %v1497_v58 = vmul.f32 0.5, %v1496_v62 }
 0x43b   : > { %v2508_v20 = vpop.eup %2507 }
 0x43c   : > { %v1502_v26 = vmul.f32 %v2508_v20, %v1497_v58 }
 0x43e   : > { %v1511_v51 = vsel %vm1510_vm15, %v1502_v26, 0.0  ;;  %v1516_v27 = vsel %vm1510_vm15, %v1502_v26, %v3451_v52 }
 0x43f   : > { %v1512_v34 = vpack.c.bf16 %v1511_v51, %v1511_v51  ;;  %v1527_v39 = vpack.c.bf16 %v1516_v27, %v1516_v27 }
 0x441   : > { %2265 = vst [vmem:[%s1888_s13 + $0x14] sm:$0xf] %v1512_v34  ;;  %1536 = vmatmul.bf16.vlgmr.msrb.gmra.mxu0 %v1527_v39  ;;  %1549 = vmatmul.bf16.vlgmr.msrb.gmra.mxu1 %v1527_v39  ;;  %s1761_s13 = scalar_lea.hbm %s3573_s6, %s2283_s28 }
 0x442   : > { %1562 = vmatmul.bf16.vlgmr.msrb.gmra.mxu2 %v1527_v39  ;;  %1575 = vmatmul.bf16.vlgmr.msrb.gmra.mxu3 %v1527_v39  ;;  %s1765_s11 = sshll.u32 %s1761_s13, 4  ;;  %s1766_s11 = int_to_ptr.hbm [resolvable:$true] %s1765_s11 }
 0x443   : > { %s2633_s16 = sshra.s32 %s1766_s11, 4  ;;  %s2634_s16 = int_to_ptr.hbm [resolvable:$true] %s2633_s16 }
 0x444   : > { %s2635_s20 = scalar_lea.hbm %s2634_s16, 8  ;;  %p2640_p10 = scmp.lt.s32.totalorder %s2634_s16, %s3573_s6 }
 0x445   : > { %p2636_p5 = scmp.ne.s32.totalorder %s2634_s16, %s2635_s20  ;;  %p2641_p13 = scmp.lt.s32.totalorder %s2639_s29, %s2635_s20 }
 0x447   : > { %p2637_p7 = pnand %p2636_p5, %p2843_p9  ;;  %p2642_p0 = por %p2641_p13, %p2640_p10 }
 0x449   : > { %p2638_p8 = pneg %p2637_p7 }
 0x44b   : > { %p2643_p1 = pnand %p2642_p0, %p2638_p8 }
 0x4be   : > { %v1537_v33 = vpop.f32.mrf.mxu0  ;;  %v1550_v40 = vpop.f32.mrf.mxu1 }
 0x4bf   : > { %v1580_v42 = vadd.f32 %v2267_v56, %v1537_v33  ;;  %v1581_v43 = vadd.f32 %v2268_v8, %v1550_v40 }
 0x4c1   : > { %v1584_v38 = vmul.f32 0.5, %v1580_v42  ;;  %v1588_v46 = vmul.f32 0.5, %v1581_v43 }
 0x4c3   : > { %2509 = vtanh.f32 %v1584_v38 }
 0x4c4   : > { %2511 = vtanh.f32 %v1588_v46  ;;  %v1707_v46 = vpop.permute.xlu1 %1706 }
 0x4c5   : > { %v1563_v2 = vpop.f32.mrf.mxu2  ;;  %v1576_v50 = vpop.f32.mrf.mxu3  ;;  %vm1708_vm1 = vcmp.eq.s32.totalorder %v1707_v46, 1 }
 0x4c6   : > { %v1582_v59 = vadd.f32 %v2269_v47, %v1563_v2  ;;  %v1583_v61 = vadd.f32 %v2270_v48, %v1576_v50  ;;  %v1539_v18 = vpop.f32.mrf.mxu0  ;;  %v1552_v32 = vpop.f32.mrf.mxu1 }
 0x4c8   : > { %2513 = vtanh.f32 %v1582_v59  ;;  %v1593_v6 = vmul.f32 0.5, %v1583_v61 }
 0x4c9   : > { %v2510_v7 = vpop.eup %2509 }
 0x4ca   : > { %v2512_v10 = vpop.eup %2511  ;;  %v1586_v14 = vadd.f32 1.0, %v2510_v7  ;;  %2515 = vtanh.f32 %v1593_v6 }
 0x4cb   : > { %v1590_v22 = vadd.f32 1.0, %v2512_v10 }
 0x4cc   : > { %v1587_v52 = vmul.f32 0.5, %v1586_v14 }
 0x4cd   : > { %v1591_v15 = vmul.f32 0.5, %v1590_v22  ;;  %v1565_v19 = vpop.f32.mrf.mxu2  ;;  %v1578_v53 = vpop.f32.mrf.mxu3 }
 0x4ce   : > { %v2514_v57 = vpop.eup %2513 }
 0x4cf   : > { %v1597_v0 = vmul.f32 %v1591_v15, %v1517_v31  ;;  %v1598_v1 = vmul.f32 %v2514_v57, %v1587_v52 }
 0x4d0   : > { %v2516_v5 = vpop.eup %2515 }
 0x4d1   : > { %v1599_v11 = vadd.f32 %v1598_v1, %v1597_v0  ;;  %v1595_v13 = vadd.f32 1.0, %v2516_v5 }
 0x4d3   : > { %2517 = vtanh.f32 %v1599_v11  ;;  %v1616_v12 = vsel %vm1609_vm0, %v1599_v11, %v1517_v31  ;;  %v1596_v17 = vmul.f32 0.5, %v1595_v13 }
 0x4d9   : > { %v2518_v23 = vpop.eup %2517 }
 0x4da   : > { %v1601_v24 = vmul.f32 %v2518_v23, %v1596_v17 }
 0x4dc   : > { %v1610_v25 = vsel %vm1609_vm0, %v1601_v24, 0.0  ;;  %v3496_v29 = vsel %vm1609_vm0, %v1601_v24, %v1516_v27 }
 0x4dd   : > { %v1611_v35 = vpack.c.bf16 %v1610_v25, %v1610_v25  ;;  %v1626_v36 = vpack.c.bf16 %v3496_v29, %v3496_v29 }
 0x4df   : > { %2272 = vst [vmem:[%s1896_s9 + $0x18] sm:$0xf] %v1611_v35  ;;  %1635 = vmatmul.bf16.vlgmr.msra.gmra.mxu0 %v1626_v36  ;;  %1648 = vmatmul.bf16.vlgmr.msra.gmra.mxu1 %v1626_v36  ;;  %s1763_s9 = sshll.u32 %s410_s23, 4  ;;  %s1764_s9 = int_to_ptr.vmem [resolvable:$true] %s1763_s9 }
 0x4e0   : > { %1661 = vmatmul.bf16.vlgmr.msra.gmra.mxu2 %v1626_v36  ;;  %1674 = vmatmul.bf16.vlgmr.msra.gmra.mxu3 %v1626_v36 }
 0x55c   : > { %v1636_v41 = vpop.f32.mrf.mxu0  ;;  %v1649_v45 = vpop.f32.mrf.mxu1 }
 0x55d   : > { %v1679_v49 = vadd.f32 %v2274_v37, %v1636_v41  ;;  %v1680_v54 = vadd.f32 %v2275_v44, %v1649_v45 }
 0x55f   : > { %v1683_v55 = vmul.f32 0.5, %v1679_v49  ;;  %v1687_v60 = vmul.f32 0.5, %v1680_v54 }
 0x561   : > { %2519 = vtanh.f32 %v1683_v55 }
 0x562   : > { %2521 = vtanh.f32 %v1687_v60 }
 0x563   : > { %v1662_v4 = vpop.f32.mrf.mxu2  ;;  %v1675_v16 = vpop.f32.mrf.mxu3 }
 0x564   : > { %v1681_v21 = vadd.f32 %v2276_v3, %v1662_v4  ;;  %v1682_v28 = vadd.f32 %v2277_v9, %v1675_v16  ;;  %v1638_v30 = vpop.f32.mrf.mxu0  ;;  %v1651_v31 = vpop.f32.mrf.mxu1 }
 0x566   : > { %2523 = vtanh.f32 %v1681_v21  ;;  %v1692_v62 = vmul.f32 0.5, %v1682_v28 }
 0x567   : > { %v2520_v58 = vpop.eup %2519 }
 0x568   : > { %v2522_v20 = vpop.eup %2521  ;;  %v1685_v26 = vadd.f32 1.0, %v2520_v58  ;;  %2525 = vtanh.f32 %v1692_v62 }
 0x569   : > { %v1689_v51 = vadd.f32 1.0, %v2522_v20 }
 0x56a   : > { %v1686_v27 = vmul.f32 0.5, %v1685_v26 }
 0x56b   : > { %v1690_v34 = vmul.f32 0.5, %v1689_v51  ;;  %v1664_v39 = vpop.f32.mrf.mxu2  ;;  %v1677_v56 = vpop.f32.mrf.mxu3 }
 0x56c   : > { %v2524_v33 = vpop.eup %2523 }
 0x56d   : > { %v1696_v8 = vmul.f32 %v1690_v34, %v1616_v12  ;;  %v1697_v40 = vmul.f32 %v2524_v33, %v1686_v27 }
 0x56e   : > { %v2526_v42 = vpop.eup %2525 }
 0x56f   : > { %v1698_v43 = vadd.f32 %v1697_v40, %v1696_v8  ;;  %v1694_v38 = vadd.f32 1.0, %v2526_v42 }
 0x571   : > { %2527 = vtanh.f32 %v1698_v43  ;;  %v1695_v47 = vmul.f32 0.5, %v1694_v38 }
 0x577   : > { %v2528_v2 = vpop.eup %2527 }
 0x578   : > { %v1700_v48 = vmul.f32 %v2528_v2, %v1695_v47 }
 0x57a   : > { %v1709_v50 = vsel %vm1708_vm1, %v1700_v48, 0.0  ;;  %v1714_v59 = vsel %vm1708_vm1, %v1700_v48, %v3496_v29 }
 0x57b   : > { %v1710_v61 = vpack.c.bf16 %v1709_v50, %v1709_v50  ;;  %1721 = vst [vmem:[%s410_s23] sm:$0xff] %v1714_v59 }
 0x57c   : > { %2646 = shalt.err (!%p2643_p1)
}
 0x57d   : > { %2364 = dma.vmem_to_hbm [thread:$0]  (%p2843_p9), %s1764_s9, 128, %s1766_s11, %s1728_s24   ;;  %2279 = vst [vmem:[%s1904_s17 + $0x1c] sm:$0xf] %v1710_v61 }
 0x57e   : > { %s1723_s7 = scalar_lea.sflag [#allocation7], %s2899_s2  ;;  %s2661_s18 = sshra.s32 %s3516_s8, 4  ;;  %s2662_s18 = int_to_ptr.hbm [resolvable:$true] %s2661_s18 }
 0x57f   : > { %s2663_s19 = scalar_lea.hbm %s2662_s18, 32  ;;  %s2667_s16 = scalar_lea.hbm %s3572_s5, 64 }
 0x580   : > { %p2664_p3 = scmp.ne.s32.totalorder %s2662_s18, %s2663_s19  ;;  %p2668_p2 = scmp.lt.s32.totalorder %s2662_s18, %s3572_s5 }
 0x581   : > { %p2669_p5 = scmp.lt.s32.totalorder %s2667_s16, %s2663_s19 }
 0x582   : > { %p2665_p4 = pnand %p2664_p3, %p2843_p9 }
 0x583   : > { %p2670_p7 = por %p2669_p5, %p2668_p2 }
 0x584   : > { %p2666_p6 = pneg %p2665_p4 }
 0x586   : > { %p2671_p8 = pnand %p2670_p7, %p2666_p6 }
 0x588   : > { %2674 = shalt.err (!%p2671_p8)
}
 0x589   : > { %s2746_s2 = smov 64   ;;  %s2747_s9 = smov 128  }
 0x58a   : > { %s2748_s11 = smov 4  }
 0x58b   : > { %2363 = dma.vmem_to_hbm [thread:$0]  (%p2843_p9), %s3514_s14, 512, %s3516_s8, %s1723_s7, %s2746_s2, %s2747_s9, %s2748_s11  }
 0x58c PF: > { %s1777_s17 = sand.u32 1, %s2717_s21   ;;  %p2378_p10 = pnand %p1993_p12, %p2850_p11 }
 0x58d   : > { %s1778_s24 = scalar_lea.sflag [#allocation7], %s1777_s17 }
 0x58e   : > { %p2379_p13 = pneg %p2378_p10 }
 0x590   : > { %2708 = dma.done.wait (%p2379_p13), %s1778_s24, 512  }
 0x591   : > { %2710 = vsyncadd (%p2379_p13), %s1778_s24, 4294966784  ;;  %s1788_s28 = scalar_lea.sflag [#allocation13], %s1777_s17 }
 0x592   : > { %2712 = dma.done.wait (%p2379_p13), %s1788_s28, 128  }
 0x593   : > { %2714 = vsyncadd (%p2379_p13), %s1788_s28, 4294967168  ;;  %s29_s26 = sadd.s32 1, %s2737_s26   ;;  %s3587_s10 = sld [smem:[#allocation18_spill]] }
 0x594   : > { %p26_p0 = scmp.ge.s32.totalorder %s29_s26, 4   ;;  %s3588_s23 = sld [smem:[#allocation20_spill]] }
 0x595   : > { %s3589_s14 = sld [smem:[#allocation19_spill]]  ;;  %s3590_s21 = smov %s2721_s22 }
 0x596   : > { %s3592_s24 = smov %s2733_s25 }
 0x597   :  { %28 = sbr.rel (!%p26_p0) target bundleno = 12 (0xc), region = 153 }
 0x599   : > { %s3591_s22 = smov %s3587_s10 }
 0x59b   : > { %s3593_s25 = smov %s3589_s14 }
 0x59c   :  { %1794 = vsyncpa [#allocation6], 1 }
 0x59d   :  { %1796 = vsyncpa [#allocation6 + $0x1], 1 }
 0x59e   :  { %1797 = vsyncpa [#allocation9], 1 }
 0x59f   :  { %1799 = vsyncpa [#allocation9 + $0x1], 1 }
 0x5a0   :  { %1800 = vsyncpa [#allocation7], 1 }
 0x5a1   :  { %1802 = vsyncpa [#allocation7 + $0x1], 1 }
 0x5a2   :  { %1803 = vsyncpa [#allocation13], 1 }
 0x5a3   :  { %1805 = vsyncpa [#allocation13 + $0x1], 1 }

</bundles_post_ra>
